<compile_context>
chip_gen: v6e
topology: v6e:2x2x1
jax: 0.10.0
libtpu: 0.0.40
codegen_flags: <defaults>
</compile_context>

<pallas_src>
import jax
import jax.numpy as jnp
from jax.experimental import pallas as pl
from jax.experimental.pallas import tpu as pltpu

# ----------------------------- configuration --------------------------------
B, S, D = 2, 8, 32           # batch, text seq len, language hidden dim
H, DH = 4, 8                 # attention heads, head dim (cross & self attn)
HD = H * DH                  # inner attention dim (== D here)
T_IMG, N_TOK, DV = 2, 4, 32  # media frames, tokens per frame, visual hidden dim
M = T_IMG * N_TOK            # flattened media length
FF = 4 * D                   # feed-forward hidden dim (ff_mult = 4)
EPS = 1e-5
NEG_BIAS = -1e30             # additive mask bias (plain Python float)
XSCALE = DH ** -0.5
DSCALE = (D // H) ** -0.5
BF16 = jnp.bfloat16


# ------------------------------ kernel helpers -------------------------------
def _layernorm(x, g, b):
    mu = jnp.mean(x, axis=-1, keepdims=True)
    var = jnp.mean(jnp.square(x - mu), axis=-1, keepdims=True)
    return (x - mu) * jax.lax.rsqrt(var + EPS) * g + b


def _sdpa(q, k, v, bias, scale):
    """Multi-head attention core on merged-projection tensors.

    q: (S, HD) f32, k/v: (T, HD) f32 (already projected full-width),
    bias: (S, T) additive f32 mask (0 / -1e30).
    Returns the concatenated-head output (S, HD) f32 (pre output-projection).
    Heads are only *viewed* here; the projections themselves are full-width.
    """
    s = q.shape[0]
    t = k.shape[0]
    qh = jnp.transpose((q * scale).reshape(s, H, DH), (1, 0, 2))   # (H, S, DH)
    kh = jnp.transpose(k.reshape(t, H, DH), (1, 0, 2))             # (H, T, DH)
    vh = jnp.transpose(v.reshape(t, H, DH), (1, 0, 2))             # (H, T, DH)
    sim = jnp.einsum('hsd,htd->hst', qh, kh,
                     preferred_element_type=jnp.float32)
    sim = sim + bias[None]
    sim = sim - jnp.max(sim, axis=-1, keepdims=True)   # single stabilizing max
    p = jnp.exp(sim)
    p = p * pl.reciprocal(jnp.sum(p, axis=-1, keepdims=True), approx=True)
    o = jnp.einsum('hst,htd->hsd', p, vh,
                   preferred_element_type=jnp.float32)             # (H, S, DH)
    return jnp.transpose(o, (1, 0, 2)).reshape(s, HD)


# ------------------------------ fused kernel ---------------------------------
def otter_layer_kernel(
        # activations / masks (blocked per batch element)
        lang_ref, vis_ref, xbias_ref, xrow_ref, dbias_ref,
        # gated cross-attention block
        ln1g_ref, ln1b_ref, wq_ref, wk_ref, wv_ref, wo_ref, ag_ref,
        ln2g_ref, ln2b_ref, w1_ref, w2_ref, fg_ref,
        # decoder layer
        dln1g_ref, dln1b_ref, dwq_ref, dbq_ref, dwk_ref, dbk_ref,
        dwv_ref, dbv_ref, dwo_ref, dbo_ref,
        dln2g_ref, dln2b_ref, dw1_ref, db1_ref, dw2_ref, db2_ref,
        # output
        out_ref):
    x = lang_ref[0]                       # (S, D)  f32
    media = vis_ref[0]                    # (M, DV) bf16 (MXU input)
    xbias = xbias_ref[0]                  # (S, M)  f32 additive mask
    xrow = xrow_ref[0]                    # (S, 1)  f32 {0,1} "has media" factor
    dbias = dbias_ref[0]                  # (S, S)  f32 additive causal+pad mask
    ag = ag_ref[0]                        # tanh(attn_gate), f32 scalar (SMEM)
    fg = fg_ref[0]                        # tanh(ff_gate),   f32 scalar (SMEM)

    # ---- masked cross attention, tanh-gated residual -------------------------
    xn = _layernorm(x, ln1g_ref[...], ln1b_ref[...]).astype(BF16)
    q = jnp.dot(xn, wq_ref[...], preferred_element_type=jnp.float32)     # (S,HD)
    k = jnp.dot(media, wk_ref[...], preferred_element_type=jnp.float32)  # (M,HD)
    v = jnp.dot(media, wv_ref[...], preferred_element_type=jnp.float32)  # (M,HD)
    o = _sdpa(q, k, v, xbias, XSCALE) * xrow      # zero rows with no media yet
    proj = jnp.dot(o.astype(BF16), wo_ref[...],
                   preferred_element_type=jnp.float32)                    # (S,D)
    x = x + proj * ag

    # ---- gated feed forward ---------------------------------------------------
    xn2 = _layernorm(x, ln2g_ref[...], ln2b_ref[...]).astype(BF16)
    hdn = jnp.dot(xn2, w1_ref[...], preferred_element_type=jnp.float32)
    hdn = jax.nn.gelu(hdn, approximate=True)      # tanh-GELU -> EUP
    hdn = jnp.dot(hdn.astype(BF16), w2_ref[...],
                  preferred_element_type=jnp.float32)
    x = x + hdn * fg

    # ---- decoder: causal self attention ---------------------------------------
    res = x
    yn = _layernorm(x, dln1g_ref[...], dln1b_ref[...]).astype(BF16)
    q = jnp.dot(yn, dwq_ref[...], preferred_element_type=jnp.float32) + dbq_ref[...]
    k = jnp.dot(yn, dwk_ref[...], preferred_element_type=jnp.float32) + dbk_ref[...]
    v = jnp.dot(yn, dwv_ref[...], preferred_element_type=jnp.float32) + dbv_ref[...]
    o = _sdpa(q, k, v, dbias, DSCALE)
    attn = jnp.dot(o.astype(BF16), dwo_ref[...],
                   preferred_element_type=jnp.float32) + dbo_ref[...]
    x = res + attn

    # ---- decoder: MLP ----------------------------------------------------------
    res = x
    yn2 = _layernorm(x, dln2g_ref[...], dln2b_ref[...]).astype(BF16)
    m = jnp.dot(yn2, dw1_ref[...], preferred_element_type=jnp.float32) + db1_ref[...]
    m = jax.nn.gelu(m, approximate=True)
    m = jnp.dot(m.astype(BF16), dw2_ref[...],
                preferred_element_type=jnp.float32) + db2_ref[...]
    out_ref[0] = res + m


# ------------------------------ call wrapper ----------------------------------
def compute_text_time(media_locations, attend_previous):
    tt = jnp.cumsum(media_locations.astype(jnp.int32), axis=-1)
    if not attend_previous:
        tt = jnp.where(media_locations, tt, tt + 1)
        cnt = jnp.sum(media_locations.astype(jnp.int32), axis=-1, keepdims=True)
        tt = jnp.where(tt > cnt, 0, tt)
    return tt


def otter_layer_forward(lang_x, vis_x, media_locations, attend_previous,
                        attention_mask, p):
    vmem = pl.BlockSpec(memory_space=pltpu.MemorySpace.VMEM)   # whole array
    smem = pl.BlockSpec(memory_space=pltpu.MemorySpace.SMEM)   # scalar gates

    def bspec(*tail):  # per-batch-element block of a (B, ...) array
        nd = len(tail)
        return pl.BlockSpec((1,) + tail, lambda b, _n=nd: (b,) + (0,) * _n)

    bf = lambda w: w.astype(BF16)

    # ---- masks & dtype prep (plain JAX; masks become additive biases) --------
    vis = vis_x.reshape(B, M, DV).astype(BF16)
    tt = compute_text_time(media_locations, attend_previous)            # (B, S)
    media_time = jnp.repeat(jnp.arange(1, T_IMG + 1, dtype=jnp.int32), N_TOK)
    xbias = jnp.where(tt[:, :, None] == media_time[None, None, :],
                      0.0, NEG_BIAS).astype(jnp.float32)                # (B,S,M)
    xrow = (tt > 0).astype(jnp.float32)[:, :, None]                     # (B,S,1)
    am = attention_mask.astype(jnp.float32)                             # (B, S)
    causal = jnp.tril(jnp.ones((S, S), jnp.float32))
    dbias = jnp.where((causal[None, :, :] * am[:, None, :]) > 0.0,
                      0.0, NEG_BIAS).astype(jnp.float32)                # (B,S,S)

    inputs = [
        (lang_x.astype(jnp.float32), bspec(S, D)),
        (vis, bspec(M, DV)),
        (xbias, bspec(S, M)),
        (xrow, bspec(S, 1)),
        (dbias, bspec(S, S)),
        # gated cross-attention block
        (p['ln1_g'], vmem), (p['ln1_b'], vmem),
        (bf(p['wq']), vmem), (bf(p['wk']), vmem),
        (bf(p['wv']), vmem), (bf(p['wo']), vmem),
        (jnp.tanh(p['attn_gate']).reshape(1), smem),
        (p['ln2_g'], vmem), (p['ln2_b'], vmem),
        (bf(p['w1']), vmem), (bf(p['w2']), vmem),
        (jnp.tanh(p['ff_gate']).reshape(1), smem),
        # decoder layer
        (p['dln1_g'], vmem), (p['dln1_b'], vmem),
        (bf(p['dwq']), vmem), (p['dbq'], vmem),
        (bf(p['dwk']), vmem), (p['dbk'], vmem),
        (bf(p['dwv']), vmem), (p['dbv'], vmem),
        (bf(p['dwo']), vmem), (p['dbo'], vmem),
        (p['dln2_g'], vmem), (p['dln2_b'], vmem),
        (bf(p['dw1']), vmem), (p['db1'], vmem),
        (bf(p['dw2']), vmem), (p['db2'], vmem),
    ]
    args = [a for a, _ in inputs]
    in_specs = [s for _, s in inputs]

    return pl.pallas_call(
        otter_layer_kernel,
        out_shape=jax.ShapeDtypeStruct((B, S, D), jnp.float32),
        grid=(B,),
        in_specs=in_specs,
        out_specs=bspec(S, D),
        compiler_params=pltpu.CompilerParams(
            dimension_semantics=("parallel",)),
    )(*args)


class OtterLayerPallas:
    """JAX/Pallas equivalent of OtterLayer (fused gated x-attn + decoder layer)."""

    def __init__(self, params):
        self.params = params
        self.vis_x = None
        self.media_locations = None
        self.attend_previous = True

    def is_conditioned(self):
        return self.vis_x is not None

    def condition_vis_x(self, vis_x):
        self.vis_x = vis_x

    def condition_media_locations(self, media_locations):
        self.media_locations = media_locations

    def condition_attend_previous(self, attend_previous):
        self.attend_previous = attend_previous

    def forward(self, lang_x, attention_mask=None):
        if self.vis_x is None:
            raise ValueError('vis_x must be conditioned before forward pass')
        if self.media_locations is None:
            raise ValueError('media_locations must be conditioned before forward pass')
        if attention_mask is None:
            attention_mask = jnp.ones((B, S), jnp.float32)
        return otter_layer_forward(lang_x, self.vis_x, self.media_locations,
                                   self.attend_previous, attention_mask,
                                   self.params)


# ------------------------------ parameter init --------------------------------
def init_params(key):
    ks = jax.random.split(key, 12)
    w = lambda k, shp: (0.02 * jax.random.normal(k, shp)).astype(jnp.float32)
    return {
        # gated cross-attention block
        'ln1_g': jnp.ones((1, D), jnp.float32), 'ln1_b': jnp.zeros((1, D), jnp.float32),
        'wq': w(ks[0], (D, HD)), 'wk': w(ks[1], (DV, HD)), 'wv': w(ks[2], (DV, HD)),
        'wo': w(ks[3], (HD, D)),
        # module inits gates to 0 (identity); 0.5 so the gated path is exercised
        'attn_gate': jnp.full((1, 1), 0.5, jnp.float32),
        'ln2_g': jnp.ones((1, D), jnp.float32), 'ln2_b': jnp.zeros((1, D), jnp.float32),
        'w1': w(ks[4], (D, FF)), 'w2': w(ks[5], (FF, D)),
        'ff_gate': jnp.full((1, 1), 0.5, jnp.float32),
        # decoder layer (representative pre-LN transformer decoder layer)
        'dln1_g': jnp.ones((1, D), jnp.float32), 'dln1_b': jnp.zeros((1, D), jnp.float32),
        'dwq': w(ks[6], (D, D)), 'dbq': jnp.zeros((1, D), jnp.float32),
        'dwk': w(ks[7], (D, D)), 'dbk': jnp.zeros((1, D), jnp.float32),
        'dwv': w(ks[8], (D, D)), 'dbv': jnp.zeros((1, D), jnp.float32),
        'dwo': w(ks[9], (D, D)), 'dbo': jnp.zeros((1, D), jnp.float32),
        'dln2_g': jnp.ones((1, D), jnp.float32), 'dln2_b': jnp.zeros((1, D), jnp.float32),
        'dw1': w(ks[10], (D, FF)), 'db1': jnp.zeros((1, FF), jnp.float32),
        'dw2': w(ks[11], (FF, D)), 'db2': jnp.zeros((1, D), jnp.float32),
    }


# ----------------------------------- main --------------------------------------
if __name__ == "__main__":
    key = jax.random.PRNGKey(0)
    kp, kl, kv = jax.random.split(key, 3)

    params = init_params(kp)
    layer = OtterLayerPallas(params)

    lang_x = jax.random.normal(kl, (B, S, D), jnp.float32)
    vis_x = jax.random.normal(kv, (B, T_IMG, N_TOK, DV), jnp.float32)
    media_locations = jnp.array([[1, 0, 0, 0, 1, 0, 0, 0],
                                 [1, 0, 1, 0, 0, 0, 0, 0]], dtype=bool)
    attention_mask = jnp.array([[1, 1, 1, 1, 1, 1, 1, 1],
                                [1, 1, 1, 1, 1, 1, 0, 0]], jnp.float32)

    layer.condition_vis_x(vis_x)
    layer.condition_media_locations(media_locations)
    layer.condition_attend_previous(True)

    out = layer.forward(lang_x, attention_mask=attention_mask)
    out = jax.block_until_ready(out)

    assert out.shape == (B, S, D)
    assert bool(jnp.all(jnp.isfinite(out)))
    print("KERNEL_OK")
</pallas_src>

<mosaic_0001>
module attributes {stable_mosaic.version = 11 : i64} {
  func.func @otter_layer_kernel(%arg0: i32, %arg1: memref<1x8x32xf32, #tpu.memory_space<vmem>>, %arg2: memref<1x8x32xbf16, #tpu.memory_space<vmem>>, %arg3: memref<1x8x8xf32, #tpu.memory_space<vmem>>, %arg4: memref<1x8x1xf32, #tpu.memory_space<vmem>>, %arg5: memref<1x8x8xf32, #tpu.memory_space<vmem>>, %arg6: memref<1x32xf32, #tpu.memory_space<vmem>>, %arg7: memref<1x32xf32, #tpu.memory_space<vmem>>, %arg8: memref<32x32xbf16, #tpu.memory_space<vmem>>, %arg9: memref<32x32xbf16, #tpu.memory_space<vmem>>, %arg10: memref<32x32xbf16, #tpu.memory_space<vmem>>, %arg11: memref<32x32xbf16, #tpu.memory_space<vmem>>, %arg12: memref<1xf32, #tpu.memory_space<smem>>, %arg13: memref<1x32xf32, #tpu.memory_space<vmem>>, %arg14: memref<1x32xf32, #tpu.memory_space<vmem>>, %arg15: memref<32x128xbf16, #tpu.memory_space<vmem>>, %arg16: memref<128x32xbf16, #tpu.memory_space<vmem>>, %arg17: memref<1xf32, #tpu.memory_space<smem>>, %arg18: memref<1x32xf32, #tpu.memory_space<vmem>>, %arg19: memref<1x32xf32, #tpu.memory_space<vmem>>, %arg20: memref<32x32xbf16, #tpu.memory_space<vmem>>, %arg21: memref<1x32xf32, #tpu.memory_space<vmem>>, %arg22: memref<32x32xbf16, #tpu.memory_space<vmem>>, %arg23: memref<1x32xf32, #tpu.memory_space<vmem>>, %arg24: memref<32x32xbf16, #tpu.memory_space<vmem>>, %arg25: memref<1x32xf32, #tpu.memory_space<vmem>>, %arg26: memref<32x32xbf16, #tpu.memory_space<vmem>>, %arg27: memref<1x32xf32, #tpu.memory_space<vmem>>, %arg28: memref<1x32xf32, #tpu.memory_space<vmem>>, %arg29: memref<1x32xf32, #tpu.memory_space<vmem>>, %arg30: memref<32x128xbf16, #tpu.memory_space<vmem>>, %arg31: memref<1x128xf32, #tpu.memory_space<vmem>>, %arg32: memref<128x32xbf16, #tpu.memory_space<vmem>>, %arg33: memref<1x32xf32, #tpu.memory_space<vmem>>, %arg34: memref<1x8x32xf32, #tpu.memory_space<vmem>>) attributes {dimension_semantics = [#tpu.dimension_semantics<parallel>], iteration_bounds = array<i64: 2>, scalar_prefetch = 0 : i64, scratch_operands = 0 : i64, tpu.core_type = #tpu.core_type<tc>, window_params = [{transform_indices = @transform_0, window_bounds = array<i64: 1, 8, 32>}, {transform_indices = @transform_1, window_bounds = array<i64: 1, 8, 32>}, {transform_indices = @transform_2, window_bounds = array<i64: 1, 8, 8>}, {transform_indices = @transform_3, window_bounds = array<i64: 1, 8, 1>}, {transform_indices = @transform_4, window_bounds = array<i64: 1, 8, 8>}, {pipeline_mode = #tpu.pipeline_mode<synchronous>, transform_indices = @transform_5, window_bounds = array<i64: 1, 32>}, {pipeline_mode = #tpu.pipeline_mode<synchronous>, transform_indices = @transform_6, window_bounds = array<i64: 1, 32>}, {pipeline_mode = #tpu.pipeline_mode<synchronous>, transform_indices = @transform_7, window_bounds = array<i64: 32, 32>}, {pipeline_mode = #tpu.pipeline_mode<synchronous>, transform_indices = @transform_8, window_bounds = array<i64: 32, 32>}, {pipeline_mode = #tpu.pipeline_mode<synchronous>, transform_indices = @transform_9, window_bounds = array<i64: 32, 32>}, {pipeline_mode = #tpu.pipeline_mode<synchronous>, transform_indices = @transform_10, window_bounds = array<i64: 32, 32>}, {transform_indices = @transform_11, window_bounds = array<i64: 1>}, {pipeline_mode = #tpu.pipeline_mode<synchronous>, transform_indices = @transform_12, window_bounds = array<i64: 1, 32>}, {pipeline_mode = #tpu.pipeline_mode<synchronous>, transform_indices = @transform_13, window_bounds = array<i64: 1, 32>}, {pipeline_mode = #tpu.pipeline_mode<synchronous>, transform_indices = @transform_14, window_bounds = array<i64: 32, 128>}, {pipeline_mode = #tpu.pipeline_mode<synchronous>, transform_indices = @transform_15, window_bounds = array<i64: 128, 32>}, {transform_indices = @transform_16, window_bounds = array<i64: 1>}, {pipeline_mode = #tpu.pipeline_mode<synchronous>, transform_indices = @transform_17, window_bounds = array<i64: 1, 32>}, {pipeline_mode = #tpu.pipeline_mode<synchronous>, transform_indices = @transform_18, window_bounds = array<i64: 1, 32>}, {pipeline_mode = #tpu.pipeline_mode<synchronous>, transform_indices = @transform_19, window_bounds = array<i64: 32, 32>}, {pipeline_mode = #tpu.pipeline_mode<synchronous>, transform_indices = @transform_20, window_bounds = array<i64: 1, 32>}, {pipeline_mode = #tpu.pipeline_mode<synchronous>, transform_indices = @transform_21, window_bounds = array<i64: 32, 32>}, {pipeline_mode = #tpu.pipeline_mode<synchronous>, transform_indices = @transform_22, window_bounds = array<i64: 1, 32>}, {pipeline_mode = #tpu.pipeline_mode<synchronous>, transform_indices = @transform_23, window_bounds = array<i64: 32, 32>}, {pipeline_mode = #tpu.pipeline_mode<synchronous>, transform_indices = @transform_24, window_bounds = array<i64: 1, 32>}, {pipeline_mode = #tpu.pipeline_mode<synchronous>, transform_indices = @transform_25, window_bounds = array<i64: 32, 32>}, {pipeline_mode = #tpu.pipeline_mode<synchronous>, transform_indices = @transform_26, window_bounds = array<i64: 1, 32>}, {pipeline_mode = #tpu.pipeline_mode<synchronous>, transform_indices = @transform_27, window_bounds = array<i64: 1, 32>}, {pipeline_mode = #tpu.pipeline_mode<synchronous>, transform_indices = @transform_28, window_bounds = array<i64: 1, 32>}, {pipeline_mode = #tpu.pipeline_mode<synchronous>, transform_indices = @transform_29, window_bounds = array<i64: 32, 128>}, {pipeline_mode = #tpu.pipeline_mode<synchronous>, transform_indices = @transform_30, window_bounds = array<i64: 1, 128>}, {pipeline_mode = #tpu.pipeline_mode<synchronous>, transform_indices = @transform_31, window_bounds = array<i64: 128, 32>}, {pipeline_mode = #tpu.pipeline_mode<synchronous>, transform_indices = @transform_32, window_bounds = array<i64: 1, 32>}, {transform_indices = @transform_33, window_bounds = array<i64: 1, 8, 32>}]} {
    %c0 = arith.constant 0 : index
    %c0_0 = arith.constant 0 : index
    %c0_1 = arith.constant 0 : index
    %0 = vector.load %arg1[%c0, %c0_0, %c0_1] : memref<1x8x32xf32, #tpu.memory_space<vmem>>, vector<1x8x32xf32>
    %1 = vector.shape_cast %0 : vector<1x8x32xf32> to vector<8x32xf32>
    %c0_2 = arith.constant 0 : index
    %c0_3 = arith.constant 0 : index
    %c0_4 = arith.constant 0 : index
    %2 = vector.load %arg2[%c0_2, %c0_3, %c0_4] : memref<1x8x32xbf16, #tpu.memory_space<vmem>>, vector<1x8x32xbf16>
    %3 = vector.shape_cast %2 : vector<1x8x32xbf16> to vector<8x32xbf16>
    %c0_5 = arith.constant 0 : index
    %c0_6 = arith.constant 0 : index
    %c0_7 = arith.constant 0 : index
    %4 = vector.load %arg3[%c0_5, %c0_6, %c0_7] : memref<1x8x8xf32, #tpu.memory_space<vmem>>, vector<1x8x8xf32>
    %5 = vector.shape_cast %4 : vector<1x8x8xf32> to vector<8x8xf32>
    %c0_8 = arith.constant 0 : index
    %c0_9 = arith.constant 0 : index
    %c0_10 = arith.constant 0 : index
    %6 = vector.load %arg4[%c0_8, %c0_9, %c0_10] : memref<1x8x1xf32, #tpu.memory_space<vmem>>, vector<1x8x1xf32>
    %7 = vector.shape_cast %6 : vector<1x8x1xf32> to vector<8x1xf32>
    %c0_11 = arith.constant 0 : index
    %c0_12 = arith.constant 0 : index
    %c0_13 = arith.constant 0 : index
    %8 = vector.load %arg5[%c0_11, %c0_12, %c0_13] : memref<1x8x8xf32, #tpu.memory_space<vmem>>, vector<1x8x8xf32>
    %9 = vector.shape_cast %8 : vector<1x8x8xf32> to vector<8x8xf32>
    %c0_14 = arith.constant 0 : index
    %10 = memref.load %arg12[%c0_14] : memref<1xf32, #tpu.memory_space<smem>>
    %c0_15 = arith.constant 0 : index
    %11 = memref.load %arg17[%c0_15] : memref<1xf32, #tpu.memory_space<smem>>
    %c0_16 = arith.constant 0 : index
    %c0_17 = arith.constant 0 : index
    %12 = vector.load %arg6[%c0_16, %c0_17] : memref<1x32xf32, #tpu.memory_space<vmem>>, vector<1x32xf32>
    %c0_18 = arith.constant 0 : index
    %c0_19 = arith.constant 0 : index
    %13 = vector.load %arg7[%c0_18, %c0_19] : memref<1x32xf32, #tpu.memory_space<vmem>>, vector<1x32xf32>
    %cst = arith.constant dense<0.000000e+00> : vector<8xf32>
    %14 = vector.multi_reduction <add>, %1, %cst [1] : vector<8x32xf32> to vector<8xf32>
    %15 = vector.shape_cast %14 : vector<8xf32> to vector<8x1xf32>
    %cst_20 = arith.constant 3.200000e+01 : f32
    %16 = vector.broadcast %cst_20 : f32 to vector<8x1xf32>
    %17 = arith.divf %15, %16 : vector<8x1xf32>
    %18 = vector.broadcast %17 : vector<8x1xf32> to vector<8x32xf32>
    %19 = arith.subf %1, %18 : vector<8x32xf32>
    %20 = arith.mulf %19, %19 : vector<8x32xf32>
    %cst_21 = arith.constant dense<0.000000e+00> : vector<8xf32>
    %21 = vector.multi_reduction <add>, %20, %cst_21 [1] : vector<8x32xf32> to vector<8xf32>
    %22 = vector.shape_cast %21 : vector<8xf32> to vector<8x1xf32>
    %cst_22 = arith.constant 3.200000e+01 : f32
    %23 = vector.broadcast %cst_22 : f32 to vector<8x1xf32>
    %24 = arith.divf %22, %23 : vector<8x1xf32>
    %25 = vector.broadcast %17 : vector<8x1xf32> to vector<8x32xf32>
    %26 = arith.subf %1, %25 : vector<8x32xf32>
    %cst_23 = arith.constant 9.99999974E-6 : f32
    %27 = vector.broadcast %cst_23 : f32 to vector<8x1xf32>
    %28 = arith.addf %24, %27 : vector<8x1xf32>
    %29 = math.rsqrt %28 : vector<8x1xf32>
    %30 = vector.broadcast %29 : vector<8x1xf32> to vector<8x32xf32>
    %31 = arith.mulf %26, %30 : vector<8x32xf32>
    %32 = vector.broadcast %12 : vector<1x32xf32> to vector<8x32xf32>
    %33 = arith.mulf %31, %32 : vector<8x32xf32>
    %34 = vector.broadcast %13 : vector<1x32xf32> to vector<8x32xf32>
    %35 = arith.addf %33, %34 : vector<8x32xf32>
    %36 = arith.truncf %35 : vector<8x32xf32> to vector<8x32xbf16>
    %c0_24 = arith.constant 0 : index
    %c0_25 = arith.constant 0 : index
    %37 = vector.load %arg8[%c0_24, %c0_25] : memref<32x32xbf16, #tpu.memory_space<vmem>>, vector<32x32xbf16>
    %cst_26 = arith.constant dense<0.000000e+00> : vector<8x32xf32>
    %38 = tpu.matmul %36, %37, %cst_26 {dimension_numbers = #tpu.dot_dimension_numbers<[1], [0], [0], [1], [0, 0, 1, 1], [], []>} : vector<8x32xbf16>, vector<32x32xbf16>, vector<8x32xf32> -> vector<8x32xf32>
    %c0_27 = arith.constant 0 : index
    %c0_28 = arith.constant 0 : index
    %39 = vector.load %arg9[%c0_27, %c0_28] : memref<32x32xbf16, #tpu.memory_space<vmem>>, vector<32x32xbf16>
    %cst_29 = arith.constant dense<0.000000e+00> : vector<8x32xf32>
    %40 = tpu.matmul %3, %39, %cst_29 {dimension_numbers = #tpu.dot_dimension_numbers<[1], [0], [0], [1], [0, 0, 1, 1], [], []>} : vector<8x32xbf16>, vector<32x32xbf16>, vector<8x32xf32> -> vector<8x32xf32>
    %c0_30 = arith.constant 0 : index
    %c0_31 = arith.constant 0 : index
    %41 = vector.load %arg10[%c0_30, %c0_31] : memref<32x32xbf16, #tpu.memory_space<vmem>>, vector<32x32xbf16>
    %cst_32 = arith.constant dense<0.000000e+00> : vector<8x32xf32>
    %42 = tpu.matmul %3, %41, %cst_32 {dimension_numbers = #tpu.dot_dimension_numbers<[1], [0], [0], [1], [0, 0, 1, 1], [], []>} : vector<8x32xbf16>, vector<32x32xbf16>, vector<8x32xf32> -> vector<8x32xf32>
    %cst_33 = arith.constant 0.353553385 : f32
    %43 = vector.broadcast %cst_33 : f32 to vector<8x32xf32>
    %44 = arith.mulf %38, %43 : vector<8x32xf32>
    %45 = vector.shape_cast %44 : vector<8x32xf32> to vector<8x4x8xf32>
    %46 = tpu.transpose %45, [1, 0, 2] : vector<8x4x8xf32> -> vector<4x8x8xf32>
    %47 = vector.shape_cast %40 : vector<8x32xf32> to vector<8x4x8xf32>
    %48 = tpu.transpose %47, [1, 0, 2] : vector<8x4x8xf32> -> vector<4x8x8xf32>
    %49 = vector.shape_cast %42 : vector<8x32xf32> to vector<8x4x8xf32>
    %50 = tpu.transpose %49, [1, 0, 2] : vector<8x4x8xf32> -> vector<4x8x8xf32>
    "tpu.trace_start"() <{level = 10 : i32, message = "hsd,htd->hst"}> : () -> ()
    %cst_34 = arith.constant dense<0.000000e+00> : vector<4x8x8xf32>
    %51 = tpu.matmul %46, %48, %cst_34 {dimension_numbers = #tpu.dot_dimension_numbers<[2], [2], [1], [1], [0, 0, 0, 1, 1, 1], [0], [0]>} : vector<4x8x8xf32>, vector<4x8x8xf32>, vector<4x8x8xf32> -> vector<4x8x8xf32>
    "tpu.trace_stop"() : () -> ()
    %52 = vector.shape_cast %5 : vector<8x8xf32> to vector<1x8x8xf32>
    %53 = vector.broadcast %52 : vector<1x8x8xf32> to vector<4x8x8xf32>
    %54 = arith.addf %51, %53 : vector<4x8x8xf32>
    %cst_35 = arith.constant dense<0xFF800000> : vector<4x8xf32>
    %55 = vector.multi_reduction <maximumf>, %54, %cst_35 [2] : vector<4x8x8xf32> to vector<4x8xf32>
    %56 = vector.shape_cast %55 : vector<4x8xf32> to vector<4x8x1xf32>
    %57 = vector.broadcast %56 : vector<4x8x1xf32> to vector<4x8x8xf32>
    %58 = arith.subf %54, %57 : vector<4x8x8xf32>
    %59 = math.exp %58 : vector<4x8x8xf32>
    %cst_36 = arith.constant dense<0.000000e+00> : vector<4x8xf32>
    %60 = vector.multi_reduction <add>, %59, %cst_36 [2] : vector<4x8x8xf32> to vector<4x8xf32>
    %61 = vector.shape_cast %60 : vector<4x8xf32> to vector<4x8x1xf32>
    %62 = tpu.reciprocal %61 {approx = true} : vector<4x8x1xf32> -> vector<4x8x1xf32>
    %63 = vector.broadcast %62 : vector<4x8x1xf32> to vector<4x8x8xf32>
    %64 = arith.mulf %59, %63 : vector<4x8x8xf32>
    "tpu.trace_start"() <{level = 10 : i32, message = "hst,htd->hsd"}> : () -> ()
    %cst_37 = arith.constant dense<0.000000e+00> : vector<4x8x8xf32>
    %65 = tpu.matmul %64, %50, %cst_37 {dimension_numbers = #tpu.dot_dimension_numbers<[2], [1], [1], [2], [0, 0, 0, 1, 1, 2], [0], [0]>} : vector<4x8x8xf32>, vector<4x8x8xf32>, vector<4x8x8xf32> -> vector<4x8x8xf32>
    "tpu.trace_stop"() : () -> ()
    %66 = tpu.transpose %65, [1, 0, 2] : vector<4x8x8xf32> -> vector<8x4x8xf32>
    %67 = vector.shape_cast %66 : vector<8x4x8xf32> to vector<8x32xf32>
    %68 = vector.broadcast %7 : vector<8x1xf32> to vector<8x32xf32>
    %69 = arith.mulf %67, %68 : vector<8x32xf32>
    %70 = arith.truncf %69 : vector<8x32xf32> to vector<8x32xbf16>
    %c0_38 = arith.constant 0 : index
    %c0_39 = arith.constant 0 : index
    %71 = vector.load %arg11[%c0_38, %c0_39] : memref<32x32xbf16, #tpu.memory_space<vmem>>, vector<32x32xbf16>
    %cst_40 = arith.constant dense<0.000000e+00> : vector<8x32xf32>
    %72 = tpu.matmul %70, %71, %cst_40 {dimension_numbers = #tpu.dot_dimension_numbers<[1], [0], [0], [1], [0, 0, 1, 1], [], []>} : vector<8x32xbf16>, vector<32x32xbf16>, vector<8x32xf32> -> vector<8x32xf32>
    %73 = vector.broadcast %10 : f32 to vector<8x32xf32>
    %74 = arith.mulf %72, %73 : vector<8x32xf32>
    %75 = arith.addf %1, %74 : vector<8x32xf32>
    %c0_41 = arith.constant 0 : index
    %c0_42 = arith.constant 0 : index
    %76 = vector.load %arg13[%c0_41, %c0_42] : memref<1x32xf32, #tpu.memory_space<vmem>>, vector<1x32xf32>
    %c0_43 = arith.constant 0 : index
    %c0_44 = arith.constant 0 : index
    %77 = vector.load %arg14[%c0_43, %c0_44] : memref<1x32xf32, #tpu.memory_space<vmem>>, vector<1x32xf32>
    %cst_45 = arith.constant dense<0.000000e+00> : vector<8xf32>
    %78 = vector.multi_reduction <add>, %75, %cst_45 [1] : vector<8x32xf32> to vector<8xf32>
    %79 = vector.shape_cast %78 : vector<8xf32> to vector<8x1xf32>
    %cst_46 = arith.constant 3.200000e+01 : f32
    %80 = vector.broadcast %cst_46 : f32 to vector<8x1xf32>
    %81 = arith.divf %79, %80 : vector<8x1xf32>
    %82 = vector.broadcast %81 : vector<8x1xf32> to vector<8x32xf32>
    %83 = arith.subf %75, %82 : vector<8x32xf32>
    %84 = arith.mulf %83, %83 : vector<8x32xf32>
    %cst_47 = arith.constant dense<0.000000e+00> : vector<8xf32>
    %85 = vector.multi_reduction <add>, %84, %cst_47 [1] : vector<8x32xf32> to vector<8xf32>
    %86 = vector.shape_cast %85 : vector<8xf32> to vector<8x1xf32>
    %cst_48 = arith.constant 3.200000e+01 : f32
    %87 = vector.broadcast %cst_48 : f32 to vector<8x1xf32>
    %88 = arith.divf %86, %87 : vector<8x1xf32>
    %89 = vector.broadcast %81 : vector<8x1xf32> to vector<8x32xf32>
    %90 = arith.subf %75, %89 : vector<8x32xf32>
    %cst_49 = arith.constant 9.99999974E-6 : f32
    %91 = vector.broadcast %cst_49 : f32 to vector<8x1xf32>
    %92 = arith.addf %88, %91 : vector<8x1xf32>
    %93 = math.rsqrt %92 : vector<8x1xf32>
    %94 = vector.broadcast %93 : vector<8x1xf32> to vector<8x32xf32>
    %95 = arith.mulf %90, %94 : vector<8x32xf32>
    %96 = vector.broadcast %76 : vector<1x32xf32> to vector<8x32xf32>
    %97 = arith.mulf %95, %96 : vector<8x32xf32>
    %98 = vector.broadcast %77 : vector<1x32xf32> to vector<8x32xf32>
    %99 = arith.addf %97, %98 : vector<8x32xf32>
    %100 = arith.truncf %99 : vector<8x32xf32> to vector<8x32xbf16>
    %c0_50 = arith.constant 0 : index
    %c0_51 = arith.constant 0 : index
    %101 = vector.load %arg15[%c0_50, %c0_51] : memref<32x128xbf16, #tpu.memory_space<vmem>>, vector<32x128xbf16>
    %cst_52 = arith.constant dense<0.000000e+00> : vector<8x128xf32>
    %102 = tpu.matmul %100, %101, %cst_52 {dimension_numbers = #tpu.dot_dimension_numbers<[1], [0], [0], [1], [0, 0, 1, 1], [], []>} : vector<8x32xbf16>, vector<32x128xbf16>, vector<8x128xf32> -> vector<8x128xf32>
    %103 = arith.mulf %102, %102 : vector<8x128xf32>
    %104 = arith.mulf %102, %103 : vector<8x128xf32>
    %cst_53 = arith.constant 4.471500e-02 : f32
    %105 = vector.broadcast %cst_53 : f32 to vector<8x128xf32>
    %106 = arith.mulf %105, %104 : vector<8x128xf32>
    %107 = arith.addf %102, %106 : vector<8x128xf32>
    %cst_54 = arith.constant 0.797884583 : f32
    %108 = vector.broadcast %cst_54 : f32 to vector<8x128xf32>
    %109 = arith.mulf %108, %107 : vector<8x128xf32>
    %110 = math.tanh %109 : vector<8x128xf32>
    %cst_55 = arith.constant 1.000000e+00 : f32
    %111 = vector.broadcast %cst_55 : f32 to vector<8x128xf32>
    %112 = arith.addf %111, %110 : vector<8x128xf32>
    %cst_56 = arith.constant 5.000000e-01 : f32
    %113 = vector.broadcast %cst_56 : f32 to vector<8x128xf32>
    %114 = arith.mulf %113, %112 : vector<8x128xf32>
    %115 = arith.mulf %102, %114 : vector<8x128xf32>
    %116 = arith.truncf %115 : vector<8x128xf32> to vector<8x128xbf16>
    %c0_57 = arith.constant 0 : index
    %c0_58 = arith.constant 0 : index
    %117 = vector.load %arg16[%c0_57, %c0_58] : memref<128x32xbf16, #tpu.memory_space<vmem>>, vector<128x32xbf16>
    %cst_59 = arith.constant dense<0.000000e+00> : vector<8x32xf32>
    %118 = tpu.matmul %116, %117, %cst_59 {dimension_numbers = #tpu.dot_dimension_numbers<[1], [0], [0], [1], [0, 0, 1, 1], [], []>} : vector<8x128xbf16>, vector<128x32xbf16>, vector<8x32xf32> -> vector<8x32xf32>
    %119 = vector.broadcast %11 : f32 to vector<8x32xf32>
    %120 = arith.mulf %118, %119 : vector<8x32xf32>
    %121 = arith.addf %75, %120 : vector<8x32xf32>
    %c0_60 = arith.constant 0 : index
    %c0_61 = arith.constant 0 : index
    %122 = vector.load %arg18[%c0_60, %c0_61] : memref<1x32xf32, #tpu.memory_space<vmem>>, vector<1x32xf32>
    %c0_62 = arith.constant 0 : index
    %c0_63 = arith.constant 0 : index
    %123 = vector.load %arg19[%c0_62, %c0_63] : memref<1x32xf32, #tpu.memory_space<vmem>>, vector<1x32xf32>
    %cst_64 = arith.constant dense<0.000000e+00> : vector<8xf32>
    %124 = vector.multi_reduction <add>, %121, %cst_64 [1] : vector<8x32xf32> to vector<8xf32>
    %125 = vector.shape_cast %124 : vector<8xf32> to vector<8x1xf32>
    %cst_65 = arith.constant 3.200000e+01 : f32
    %126 = vector.broadcast %cst_65 : f32 to vector<8x1xf32>
    %127 = arith.divf %125, %126 : vector<8x1xf32>
    %128 = vector.broadcast %127 : vector<8x1xf32> to vector<8x32xf32>
    %129 = arith.subf %121, %128 : vector<8x32xf32>
    %130 = arith.mulf %129, %129 : vector<8x32xf32>
    %cst_66 = arith.constant dense<0.000000e+00> : vector<8xf32>
    %131 = vector.multi_reduction <add>, %130, %cst_66 [1] : vector<8x32xf32> to vector<8xf32>
    %132 = vector.shape_cast %131 : vector<8xf32> to vector<8x1xf32>
    %cst_67 = arith.constant 3.200000e+01 : f32
    %133 = vector.broadcast %cst_67 : f32 to vector<8x1xf32>
    %134 = arith.divf %132, %133 : vector<8x1xf32>
    %135 = vector.broadcast %127 : vector<8x1xf32> to vector<8x32xf32>
    %136 = arith.subf %121, %135 : vector<8x32xf32>
    %cst_68 = arith.constant 9.99999974E-6 : f32
    %137 = vector.broadcast %cst_68 : f32 to vector<8x1xf32>
    %138 = arith.addf %134, %137 : vector<8x1xf32>
    %139 = math.rsqrt %138 : vector<8x1xf32>
    %140 = vector.broadcast %139 : vector<8x1xf32> to vector<8x32xf32>
    %141 = arith.mulf %136, %140 : vector<8x32xf32>
    %142 = vector.broadcast %122 : vector<1x32xf32> to vector<8x32xf32>
    %143 = arith.mulf %141, %142 : vector<8x32xf32>
    %144 = vector.broadcast %123 : vector<1x32xf32> to vector<8x32xf32>
    %145 = arith.addf %143, %144 : vector<8x32xf32>
    %146 = arith.truncf %145 : vector<8x32xf32> to vector<8x32xbf16>
    %c0_69 = arith.constant 0 : index
    %c0_70 = arith.constant 0 : index
    %147 = vector.load %arg20[%c0_69, %c0_70] : memref<32x32xbf16, #tpu.memory_space<vmem>>, vector<32x32xbf16>
    %cst_71 = arith.constant dense<0.000000e+00> : vector<8x32xf32>
    %148 = tpu.matmul %146, %147, %cst_71 {dimension_numbers = #tpu.dot_dimension_numbers<[1], [0], [0], [1], [0, 0, 1, 1], [], []>} : vector<8x32xbf16>, vector<32x32xbf16>, vector<8x32xf32> -> vector<8x32xf32>
    %c0_72 = arith.constant 0 : index
    %c0_73 = arith.constant 0 : index
    %149 = vector.load %arg21[%c0_72, %c0_73] : memref<1x32xf32, #tpu.memory_space<vmem>>, vector<1x32xf32>
    %150 = vector.broadcast %149 : vector<1x32xf32> to vector<8x32xf32>
    %151 = arith.addf %148, %150 : vector<8x32xf32>
    %c0_74 = arith.constant 0 : index
    %c0_75 = arith.constant 0 : index
    %152 = vector.load %arg22[%c0_74, %c0_75] : memref<32x32xbf16, #tpu.memory_space<vmem>>, vector<32x32xbf16>
    %cst_76 = arith.constant dense<0.000000e+00> : vector<8x32xf32>
    %153 = tpu.matmul %146, %152, %cst_76 {dimension_numbers = #tpu.dot_dimension_numbers<[1], [0], [0], [1], [0, 0, 1, 1], [], []>} : vector<8x32xbf16>, vector<32x32xbf16>, vector<8x32xf32> -> vector<8x32xf32>
    %c0_77 = arith.constant 0 : index
    %c0_78 = arith.constant 0 : index
    %154 = vector.load %arg23[%c0_77, %c0_78] : memref<1x32xf32, #tpu.memory_space<vmem>>, vector<1x32xf32>
    %155 = vector.broadcast %154 : vector<1x32xf32> to vector<8x32xf32>
    %156 = arith.addf %153, %155 : vector<8x32xf32>
    %c0_79 = arith.constant 0 : index
    %c0_80 = arith.constant 0 : index
    %157 = vector.load %arg24[%c0_79, %c0_80] : memref<32x32xbf16, #tpu.memory_space<vmem>>, vector<32x32xbf16>
    %cst_81 = arith.constant dense<0.000000e+00> : vector<8x32xf32>
    %158 = tpu.matmul %146, %157, %cst_81 {dimension_numbers = #tpu.dot_dimension_numbers<[1], [0], [0], [1], [0, 0, 1, 1], [], []>} : vector<8x32xbf16>, vector<32x32xbf16>, vector<8x32xf32> -> vector<8x32xf32>
    %c0_82 = arith.constant 0 : index
    %c0_83 = arith.constant 0 : index
    %159 = vector.load %arg25[%c0_82, %c0_83] : memref<1x32xf32, #tpu.memory_space<vmem>>, vector<1x32xf32>
    %160 = vector.broadcast %159 : vector<1x32xf32> to vector<8x32xf32>
    %161 = arith.addf %158, %160 : vector<8x32xf32>
    %cst_84 = arith.constant 0.353553385 : f32
    %162 = vector.broadcast %cst_84 : f32 to vector<8x32xf32>
    %163 = arith.mulf %151, %162 : vector<8x32xf32>
    %164 = vector.shape_cast %163 : vector<8x32xf32> to vector<8x4x8xf32>
    %165 = tpu.transpose %164, [1, 0, 2] : vector<8x4x8xf32> -> vector<4x8x8xf32>
    %166 = vector.shape_cast %156 : vector<8x32xf32> to vector<8x4x8xf32>
    %167 = tpu.transpose %166, [1, 0, 2] : vector<8x4x8xf32> -> vector<4x8x8xf32>
    %168 = vector.shape_cast %161 : vector<8x32xf32> to vector<8x4x8xf32>
    %169 = tpu.transpose %168, [1, 0, 2] : vector<8x4x8xf32> -> vector<4x8x8xf32>
    "tpu.trace_start"() <{level = 10 : i32, message = "hsd,htd->hst"}> : () -> ()
    %cst_85 = arith.constant dense<0.000000e+00> : vector<4x8x8xf32>
    %170 = tpu.matmul %165, %167, %cst_85 {dimension_numbers = #tpu.dot_dimension_numbers<[2], [2], [1], [1], [0, 0, 0, 1, 1, 1], [0], [0]>} : vector<4x8x8xf32>, vector<4x8x8xf32>, vector<4x8x8xf32> -> vector<4x8x8xf32>
    "tpu.trace_stop"() : () -> ()
    %171 = vector.shape_cast %9 : vector<8x8xf32> to vector<1x8x8xf32>
    %172 = vector.broadcast %171 : vector<1x8x8xf32> to vector<4x8x8xf32>
    %173 = arith.addf %170, %172 : vector<4x8x8xf32>
    %cst_86 = arith.constant dense<0xFF800000> : vector<4x8xf32>
    %174 = vector.multi_reduction <maximumf>, %173, %cst_86 [2] : vector<4x8x8xf32> to vector<4x8xf32>
    %175 = vector.shape_cast %174 : vector<4x8xf32> to vector<4x8x1xf32>
    %176 = vector.broadcast %175 : vector<4x8x1xf32> to vector<4x8x8xf32>
    %177 = arith.subf %173, %176 : vector<4x8x8xf32>
    %178 = math.exp %177 : vector<4x8x8xf32>
    %cst_87 = arith.constant dense<0.000000e+00> : vector<4x8xf32>
    %179 = vector.multi_reduction <add>, %178, %cst_87 [2] : vector<4x8x8xf32> to vector<4x8xf32>
    %180 = vector.shape_cast %179 : vector<4x8xf32> to vector<4x8x1xf32>
    %181 = tpu.reciprocal %180 {approx = true} : vector<4x8x1xf32> -> vector<4x8x1xf32>
    %182 = vector.broadcast %181 : vector<4x8x1xf32> to vector<4x8x8xf32>
    %183 = arith.mulf %178, %182 : vector<4x8x8xf32>
    "tpu.trace_start"() <{level = 10 : i32, message = "hst,htd->hsd"}> : () -> ()
    %cst_88 = arith.constant dense<0.000000e+00> : vector<4x8x8xf32>
    %184 = tpu.matmul %183, %169, %cst_88 {dimension_numbers = #tpu.dot_dimension_numbers<[2], [1], [1], [2], [0, 0, 0, 1, 1, 2], [0], [0]>} : vector<4x8x8xf32>, vector<4x8x8xf32>, vector<4x8x8xf32> -> vector<4x8x8xf32>
    "tpu.trace_stop"() : () -> ()
    %185 = tpu.transpose %184, [1, 0, 2] : vector<4x8x8xf32> -> vector<8x4x8xf32>
    %186 = vector.shape_cast %185 : vector<8x4x8xf32> to vector<8x32xf32>
    %187 = arith.truncf %186 : vector<8x32xf32> to vector<8x32xbf16>
    %c0_89 = arith.constant 0 : index
    %c0_90 = arith.constant 0 : index
    %188 = vector.load %arg26[%c0_89, %c0_90] : memref<32x32xbf16, #tpu.memory_space<vmem>>, vector<32x32xbf16>
    %cst_91 = arith.constant dense<0.000000e+00> : vector<8x32xf32>
    %189 = tpu.matmul %187, %188, %cst_91 {dimension_numbers = #tpu.dot_dimension_numbers<[1], [0], [0], [1], [0, 0, 1, 1], [], []>} : vector<8x32xbf16>, vector<32x32xbf16>, vector<8x32xf32> -> vector<8x32xf32>
    %c0_92 = arith.constant 0 : index
    %c0_93 = arith.constant 0 : index
    %190 = vector.load %arg27[%c0_92, %c0_93] : memref<1x32xf32, #tpu.memory_space<vmem>>, vector<1x32xf32>
    %191 = vector.broadcast %190 : vector<1x32xf32> to vector<8x32xf32>
    %192 = arith.addf %189, %191 : vector<8x32xf32>
    %193 = arith.addf %121, %192 : vector<8x32xf32>
    %c0_94 = arith.constant 0 : index
    %c0_95 = arith.constant 0 : index
    %194 = vector.load %arg28[%c0_94, %c0_95] : memref<1x32xf32, #tpu.memory_space<vmem>>, vector<1x32xf32>
    %c0_96 = arith.constant 0 : index
    %c0_97 = arith.constant 0 : index
    %195 = vector.load %arg29[%c0_96, %c0_97] : memref<1x32xf32, #tpu.memory_space<vmem>>, vector<1x32xf32>
    %cst_98 = arith.constant dense<0.000000e+00> : vector<8xf32>
    %196 = vector.multi_reduction <add>, %193, %cst_98 [1] : vector<8x32xf32> to vector<8xf32>
    %197 = vector.shape_cast %196 : vector<8xf32> to vector<8x1xf32>
    %cst_99 = arith.constant 3.200000e+01 : f32
    %198 = vector.broadcast %cst_99 : f32 to vector<8x1xf32>
    %199 = arith.divf %197, %198 : vector<8x1xf32>
    %200 = vector.broadcast %199 : vector<8x1xf32> to vector<8x32xf32>
    %201 = arith.subf %193, %200 : vector<8x32xf32>
    %202 = arith.mulf %201, %201 : vector<8x32xf32>
    %cst_100 = arith.constant dense<0.000000e+00> : vector<8xf32>
    %203 = vector.multi_reduction <add>, %202, %cst_100 [1] : vector<8x32xf32> to vector<8xf32>
    %204 = vector.shape_cast %203 : vector<8xf32> to vector<8x1xf32>
    %cst_101 = arith.constant 3.200000e+01 : f32
    %205 = vector.broadcast %cst_101 : f32 to vector<8x1xf32>
    %206 = arith.divf %204, %205 : vector<8x1xf32>
    %207 = vector.broadcast %199 : vector<8x1xf32> to vector<8x32xf32>
    %208 = arith.subf %193, %207 : vector<8x32xf32>
    %cst_102 = arith.constant 9.99999974E-6 : f32
    %209 = vector.broadcast %cst_102 : f32 to vector<8x1xf32>
    %210 = arith.addf %206, %209 : vector<8x1xf32>
    %211 = math.rsqrt %210 : vector<8x1xf32>
    %212 = vector.broadcast %211 : vector<8x1xf32> to vector<8x32xf32>
    %213 = arith.mulf %208, %212 : vector<8x32xf32>
    %214 = vector.broadcast %194 : vector<1x32xf32> to vector<8x32xf32>
    %215 = arith.mulf %213, %214 : vector<8x32xf32>
    %216 = vector.broadcast %195 : vector<1x32xf32> to vector<8x32xf32>
    %217 = arith.addf %215, %216 : vector<8x32xf32>
    %218 = arith.truncf %217 : vector<8x32xf32> to vector<8x32xbf16>
    %c0_103 = arith.constant 0 : index
    %c0_104 = arith.constant 0 : index
    %219 = vector.load %arg30[%c0_103, %c0_104] : memref<32x128xbf16, #tpu.memory_space<vmem>>, vector<32x128xbf16>
    %cst_105 = arith.constant dense<0.000000e+00> : vector<8x128xf32>
    %220 = tpu.matmul %218, %219, %cst_105 {dimension_numbers = #tpu.dot_dimension_numbers<[1], [0], [0], [1], [0, 0, 1, 1], [], []>} : vector<8x32xbf16>, vector<32x128xbf16>, vector<8x128xf32> -> vector<8x128xf32>
    %c0_106 = arith.constant 0 : index
    %c0_107 = arith.constant 0 : index
    %221 = vector.load %arg31[%c0_106, %c0_107] : memref<1x128xf32, #tpu.memory_space<vmem>>, vector<1x128xf32>
    %222 = vector.broadcast %221 : vector<1x128xf32> to vector<8x128xf32>
    %223 = arith.addf %220, %222 : vector<8x128xf32>
    %224 = arith.mulf %223, %223 : vector<8x128xf32>
    %225 = arith.mulf %223, %224 : vector<8x128xf32>
    %cst_108 = arith.constant 4.471500e-02 : f32
    %226 = vector.broadcast %cst_108 : f32 to vector<8x128xf32>
    %227 = arith.mulf %226, %225 : vector<8x128xf32>
    %228 = arith.addf %223, %227 : vector<8x128xf32>
    %cst_109 = arith.constant 0.797884583 : f32
    %229 = vector.broadcast %cst_109 : f32 to vector<8x128xf32>
    %230 = arith.mulf %229, %228 : vector<8x128xf32>
    %231 = math.tanh %230 : vector<8x128xf32>
    %cst_110 = arith.constant 1.000000e+00 : f32
    %232 = vector.broadcast %cst_110 : f32 to vector<8x128xf32>
    %233 = arith.addf %232, %231 : vector<8x128xf32>
    %cst_111 = arith.constant 5.000000e-01 : f32
    %234 = vector.broadcast %cst_111 : f32 to vector<8x128xf32>
    %235 = arith.mulf %234, %233 : vector<8x128xf32>
    %236 = arith.mulf %223, %235 : vector<8x128xf32>
    %237 = arith.truncf %236 : vector<8x128xf32> to vector<8x128xbf16>
    %c0_112 = arith.constant 0 : index
    %c0_113 = arith.constant 0 : index
    %238 = vector.load %arg32[%c0_112, %c0_113] : memref<128x32xbf16, #tpu.memory_space<vmem>>, vector<128x32xbf16>
    %cst_114 = arith.constant dense<0.000000e+00> : vector<8x32xf32>
    %239 = tpu.matmul %237, %238, %cst_114 {dimension_numbers = #tpu.dot_dimension_numbers<[1], [0], [0], [1], [0, 0, 1, 1], [], []>} : vector<8x128xbf16>, vector<128x32xbf16>, vector<8x32xf32> -> vector<8x32xf32>
    %c0_115 = arith.constant 0 : index
    %c0_116 = arith.constant 0 : index
    %240 = vector.load %arg33[%c0_115, %c0_116] : memref<1x32xf32, #tpu.memory_space<vmem>>, vector<1x32xf32>
    %241 = vector.broadcast %240 : vector<1x32xf32> to vector<8x32xf32>
    %242 = arith.addf %239, %241 : vector<8x32xf32>
    %243 = arith.addf %193, %242 : vector<8x32xf32>
    %c0_117 = arith.constant 0 : index
    %c0_118 = arith.constant 0 : index
    %c0_119 = arith.constant 0 : index
    %244 = vector.load %arg34[%c0_117, %c0_118, %c0_119] : memref<1x8x32xf32, #tpu.memory_space<vmem>>, vector<1x8x32xf32>
    %245 = vector.shape_cast %244 : vector<1x8x32xf32> to vector<8x32xf32>
    %246 = vector.shape_cast %243 : vector<8x32xf32> to vector<1x8x32xf32>
    tpu.vector_store %arg34[%c0_117, %c0_118, %c0_119], %246 {strides = array<i32>} : memref<1x8x32xf32, #tpu.memory_space<vmem>>, vector<1x8x32xf32>,
    return
  }
  func.func @transform_0(%arg0: i32) -> (i32, i32, i32) {
    %c0_i32 = arith.constant 0 : i32
    %c0_i32_0 = arith.constant 0 : i32
    %c0_i32_1 = arith.constant 0 : i32
    return %arg0, %c0_i32, %c0_i32_0 : i32, i32, i32
  }
  func.func @transform_1(%arg0: i32) -> (i32, i32, i32) {
    %c0_i32 = arith.constant 0 : i32
    %c0_i32_0 = arith.constant 0 : i32
    %c0_i32_1 = arith.constant 0 : i32
    return %arg0, %c0_i32, %c0_i32_0 : i32, i32, i32
  }
  func.func @transform_2(%arg0: i32) -> (i32, i32, i32) {
    %c0_i32 = arith.constant 0 : i32
    %c0_i32_0 = arith.constant 0 : i32
    %c0_i32_1 = arith.constant 0 : i32
    return %arg0, %c0_i32, %c0_i32_0 : i32, i32, i32
  }
  func.func @transform_3(%arg0: i32) -> (i32, i32, i32) {
    %c0_i32 = arith.constant 0 : i32
    %c0_i32_0 = arith.constant 0 : i32
    %c0_i32_1 = arith.constant 0 : i32
    return %arg0, %c0_i32, %c0_i32_0 : i32, i32, i32
  }
  func.func @transform_4(%arg0: i32) -> (i32, i32, i32) {
    %c0_i32 = arith.constant 0 : i32
    %c0_i32_0 = arith.constant 0 : i32
    %c0_i32_1 = arith.constant 0 : i32
    return %arg0, %c0_i32, %c0_i32_0 : i32, i32, i32
  }
  func.func @transform_5(%arg0: i32) -> (i32, i32) {
    %c0_i32 = arith.constant 0 : i32
    %c0_i32_0 = arith.constant 0 : i32
    %c0_i32_1 = arith.constant 0 : i32
    return %c0_i32, %c0_i32_0 : i32, i32
  }
  func.func @transform_6(%arg0: i32) -> (i32, i32) {
    %c0_i32 = arith.constant 0 : i32
    %c0_i32_0 = arith.constant 0 : i32
    %c0_i32_1 = arith.constant 0 : i32
    return %c0_i32, %c0_i32_0 : i32, i32
  }
  func.func @transform_7(%arg0: i32) -> (i32, i32) {
    %c0_i32 = arith.constant 0 : i32
    %c0_i32_0 = arith.constant 0 : i32
    %c0_i32_1 = arith.constant 0 : i32
    return %c0_i32, %c0_i32_0 : i32, i32
  }
  func.func @transform_8(%arg0: i32) -> (i32, i32) {
    %c0_i32 = arith.constant 0 : i32
    %c0_i32_0 = arith.constant 0 : i32
    %c0_i32_1 = arith.constant 0 : i32
    return %c0_i32, %c0_i32_0 : i32, i32
  }
  func.func @transform_9(%arg0: i32) -> (i32, i32) {
    %c0_i32 = arith.constant 0 : i32
    %c0_i32_0 = arith.constant 0 : i32
    %c0_i32_1 = arith.constant 0 : i32
    return %c0_i32, %c0_i32_0 : i32, i32
  }
  func.func @transform_10(%arg0: i32) -> (i32, i32) {
    %c0_i32 = arith.constant 0 : i32
    %c0_i32_0 = arith.constant 0 : i32
    %c0_i32_1 = arith.constant 0 : i32
    return %c0_i32, %c0_i32_0 : i32, i32
  }
  func.func @transform_11(%arg0: i32) -> i32 {
    %c0_i32 = arith.constant 0 : i32
    %c0_i32_0 = arith.constant 0 : i32
    return %c0_i32 : i32
  }
  func.func @transform_12(%arg0: i32) -> (i32, i32) {
    %c0_i32 = arith.constant 0 : i32
    %c0_i32_0 = arith.constant 0 : i32
    %c0_i32_1 = arith.constant 0 : i32
    return %c0_i32, %c0_i32_0 : i32, i32
  }
  func.func @transform_13(%arg0: i32) -> (i32, i32) {
    %c0_i32 = arith.constant 0 : i32
    %c0_i32_0 = arith.constant 0 : i32
    %c0_i32_1 = arith.constant 0 : i32
    return %c0_i32, %c0_i32_0 : i32, i32
  }
  func.func @transform_14(%arg0: i32) -> (i32, i32) {
    %c0_i32 = arith.constant 0 : i32
    %c0_i32_0 = arith.constant 0 : i32
    %c0_i32_1 = arith.constant 0 : i32
    return %c0_i32, %c0_i32_0 : i32, i32
  }
  func.func @transform_15(%arg0: i32) -> (i32, i32) {
    %c0_i32 = arith.constant 0 : i32
    %c0_i32_0 = arith.constant 0 : i32
    %c0_i32_1 = arith.constant 0 : i32
    return %c0_i32, %c0_i32_0 : i32, i32
  }
  func.func @transform_16(%arg0: i32) -> i32 {
    %c0_i32 = arith.constant 0 : i32
    %c0_i32_0 = arith.constant 0 : i32
    return %c0_i32 : i32
  }
  func.func @transform_17(%arg0: i32) -> (i32, i32) {
    %c0_i32 = arith.constant 0 : i32
    %c0_i32_0 = arith.constant 0 : i32
    %c0_i32_1 = arith.constant 0 : i32
    return %c0_i32, %c0_i32_0 : i32, i32
  }
  func.func @transform_18(%arg0: i32) -> (i32, i32) {
    %c0_i32 = arith.constant 0 : i32
    %c0_i32_0 = arith.constant 0 : i32
    %c0_i32_1 = arith.constant 0 : i32
    return %c0_i32, %c0_i32_0 : i32, i32
  }
  func.func @transform_19(%arg0: i32) -> (i32, i32) {
    %c0_i32 = arith.constant 0 : i32
    %c0_i32_0 = arith.constant 0 : i32
    %c0_i32_1 = arith.constant 0 : i32
    return %c0_i32, %c0_i32_0 : i32, i32
  }
  func.func @transform_20(%arg0: i32) -> (i32, i32) {
    %c0_i32 = arith.constant 0 : i32
    %c0_i32_0 = arith.constant 0 : i32
    %c0_i32_1 = arith.constant 0 : i32
    return %c0_i32, %c0_i32_0 : i32, i32
  }
  func.func @transform_21(%arg0: i32) -> (i32, i32) {
    %c0_i32 = arith.constant 0 : i32
    %c0_i32_0 = arith.constant 0 : i32
    %c0_i32_1 = arith.constant 0 : i32
    return %c0_i32, %c0_i32_0 : i32, i32
  }
  func.func @transform_22(%arg0: i32) -> (i32, i32) {
    %c0_i32 = arith.constant 0 : i32
    %c0_i32_0 = arith.constant 0 : i32
    %c0_i32_1 = arith.constant 0 : i32
    return %c0_i32, %c0_i32_0 : i32, i32
  }
  func.func @transform_23(%arg0: i32) -> (i32, i32) {
    %c0_i32 = arith.constant 0 : i32
    %c0_i32_0 = arith.constant 0 : i32
    %c0_i32_1 = arith.constant 0 : i32
    return %c0_i32, %c0_i32_0 : i32, i32
  }
  func.func @transform_24(%arg0: i32) -> (i32, i32) {
    %c0_i32 = arith.constant 0 : i32
    %c0_i32_0 = arith.constant 0 : i32
    %c0_i32_1 = arith.constant 0 : i32
    return %c0_i32, %c0_i32_0 : i32, i32
  }
  func.func @transform_25(%arg0: i32) -> (i32, i32) {
    %c0_i32 = arith.constant 0 : i32
    %c0_i32_0 = arith.constant 0 : i32
    %c0_i32_1 = arith.constant 0 : i32
    return %c0_i32, %c0_i32_0 : i32, i32
  }
  func.func @transform_26(%arg0: i32) -> (i32, i32) {
    %c0_i32 = arith.constant 0 : i32
    %c0_i32_0 = arith.constant 0 : i32
    %c0_i32_1 = arith.constant 0 : i32
    return %c0_i32, %c0_i32_0 : i32, i32
  }
  func.func @transform_27(%arg0: i32) -> (i32, i32) {
    %c0_i32 = arith.constant 0 : i32
    %c0_i32_0 = arith.constant 0 : i32
    %c0_i32_1 = arith.constant 0 : i32
    return %c0_i32, %c0_i32_0 : i32, i32
  }
  func.func @transform_28(%arg0: i32) -> (i32, i32) {
    %c0_i32 = arith.constant 0 : i32
    %c0_i32_0 = arith.constant 0 : i32
    %c0_i32_1 = arith.constant 0 : i32
    return %c0_i32, %c0_i32_0 : i32, i32
  }
  func.func @transform_29(%arg0: i32) -> (i32, i32) {
    %c0_i32 = arith.constant 0 : i32
    %c0_i32_0 = arith.constant 0 : i32
    %c0_i32_1 = arith.constant 0 : i32
    return %c0_i32, %c0_i32_0 : i32, i32
  }
  func.func @transform_30(%arg0: i32) -> (i32, i32) {
    %c0_i32 = arith.constant 0 : i32
    %c0_i32_0 = arith.constant 0 : i32
    %c0_i32_1 = arith.constant 0 : i32
    return %c0_i32, %c0_i32_0 : i32, i32
  }
  func.func @transform_31(%arg0: i32) -> (i32, i32) {
    %c0_i32 = arith.constant 0 : i32
    %c0_i32_0 = arith.constant 0 : i32
    %c0_i32_1 = arith.constant 0 : i32
    return %c0_i32, %c0_i32_0 : i32, i32
  }
  func.func @transform_32(%arg0: i32) -> (i32, i32) {
    %c0_i32 = arith.constant 0 : i32
    %c0_i32_0 = arith.constant 0 : i32
    %c0_i32_1 = arith.constant 0 : i32
    return %c0_i32, %c0_i32_0 : i32, i32
  }
  func.func @transform_33(%arg0: i32) -> (i32, i32, i32) {
    %c0_i32 = arith.constant 0 : i32
    %c0_i32_0 = arith.constant 0 : i32
    %c0_i32_1 = arith.constant 0 : i32
    return %arg0, %c0_i32, %c0_i32_0 : i32, i32, i32
  }
}

</mosaic_0001>

<bundles_post_ra>
// kernel: tpu_custom_call.1
= control target key start
LH: loop header
LB: loop body
LE: loop exit
PB: predicated region body
PF: predicated region fallthrough
CT: control target
= control target key end

     0   :  { %s6077_s6 = smov 1   ;;  %s6078_s10 = smov 2   ;;  %s6987_s0 = inlined_call_operand.smem [shape: u32[34], index: -1, kind: input, shape index: {}] }
   0x1   :  { %s6144_s5 = sld [smem:[%s6987_s0]]   ;;  %s6079_s14 = smov 3  }
   0x2   :  { %s6149_s9 = sld [smem:[%s6987_s0 + %s6077_s6]]   ;;  %s6080_s18 = smov 4  }
   0x3   :  { %s6154_s13 = sld [smem:[%s6987_s0 + %s6078_s10]]   ;;  %s6081_s22 = smov 5  }
   0x4   :  { %s6159_s17 = sld [smem:[%s6987_s0 + %s6079_s14]]   ;;  %s6082_s26 = smov 6  }
   0x5   :  { %s6164_s21 = sld [smem:[%s6987_s0 + %s6080_s18]]   ;;  %s6083_s30 = smov 7  }
   0x6   :  { %s6169_s25 = sld [smem:[%s6987_s0 + %s6081_s22]]   ;;  %s6084_s4 = smov 8  }
   0x7   :  { %7018 = sst [smem:[#allocation33_spill]] %s6144_s5  ;;  %s6085_s10 = smov 9  }
   0x8   :  { %7019 = sst [smem:[#allocation34_spill]] %s6149_s9  ;;  %s6086_s15 = smov 10  }
   0x9   :  { %7020 = sst [smem:[#allocation35_spill]] %s6154_s13  ;;  %s6087_s20 = smov 11  }
   0xa   :  { %7021 = sst [smem:[#allocation36_spill]] %s6159_s17  ;;  %s6089_s1 = smov 13  }
   0xb   :  { %7022 = sst [smem:[#allocation37_spill]] %s6164_s21  ;;  %s6090_s7 = smov 14  }
   0xc   :  { %s6174_s29 = sld [smem:[%s6987_s0 + %s6082_s26]]   ;;  %s6088_s26 = smov 12  }
   0xd   :  { %s6179_s3 = sld [smem:[%s6987_s0 + %s6083_s30]]   ;;  %s6092_s22 = smov 16  }
   0xe   :  { %s6184_s8 = sld [smem:[%s6987_s0 + %s6084_s4]]   ;;  %s6093_s28 = smov 17  }
   0xf   :  { %s6189_s14 = sld [smem:[%s6987_s0 + %s6085_s10]]   ;;  %s6104_s23 = smov 28  }
  0x10   :  { %s6194_s19 = sld [smem:[%s6987_s0 + %s6086_s15]]   ;;  %s6091_s15 = smov 15  }
  0x11   :  { %s6199_s24 = sld [smem:[%s6987_s0 + %s6087_s20]]   ;;  %s6108_s13 = smov 32  }
  0x12   :  { %s6204_s30 = sld [smem:[%s6987_s0 + %s6088_s26]]  }
  0x13   :  { %7023 = sst [smem:[#allocation38_spill]] %s6179_s3 }
  0x14   :  { %7024 = sst [smem:[#allocation39_spill]] %s6184_s8 }
  0x15   :  { %7025 = sst [smem:[#allocation40_spill]] %s6189_s14  ;;  %s6109_s14 = smov 33  }
  0x16   :  { %7026 = sst [smem:[#allocation41_spill]] %s6194_s19 }
  0x17   :  { %s6209_s6 = sld [smem:[%s6987_s0 + %s6089_s1]]   ;;  %s6105_s1 = smov 29  }
  0x18   :  { %7027 = sst [smem:[#allocation42_spill]] %s6204_s30 }
  0x19   :  { %s6214_s12 = sld [smem:[%s6987_s0 + %s6090_s7]]   ;;  %s6094_s7 = smov 18  }
  0x1a   :  { %s6219_s20 = sld [smem:[%s6987_s0 + %s6091_s15]]   ;;  %s6095_s15 = smov 19  }
  0x1b   :  { %s6224_s27 = sld [smem:[%s6987_s0 + %s6092_s22]]   ;;  %s6096_s22 = smov 20  }
  0x1c   :  { %s6229_s4 = sld [smem:[%s6987_s0 + %s6093_s28]]   ;;  %s6097_s28 = smov 21  }
  0x1d   :  { %7028 = sst [smem:[#allocation43_spill]] %s6209_s6 }
  0x1e   :  { %s6234_s21 = sld [smem:[%s6987_s0 + %s6094_s7]]   ;;  %s6098_s7 = smov 22  }
  0x1f   :  { %7029 = sst [smem:[#allocation44_spill]] %s6214_s12 }
  0x20   :  { %7030 = sst [smem:[#allocation45_spill]] %s6219_s20 }
  0x21   :  { %s6239_s20 = sld [smem:[%s6987_s0 + %s6095_s15]]   ;;  %s6099_s15 = smov 23  }
  0x22   :  { %7031 = sst [smem:[#allocation46_spill]] %s6229_s4 }
  0x23   :  { %s6244_s30 = sld [smem:[%s6987_s0 + %s6096_s22]]   ;;  %s6100_s22 = smov 24  }
  0x24   :  { %s6249_s12 = sld [smem:[%s6987_s0 + %s6097_s28]]   ;;  %s6101_s28 = smov 25  }
  0x25   :  { %s6254_s19 = sld [smem:[%s6987_s0 + %s6098_s7]]   ;;  %s6102_s7 = smov 26  }
  0x26   :  { %s6264_s17 = sld [smem:[%s6987_s0 + %s6100_s22]]  }
  0x27   :  { %7032 = sst [smem:[#allocation47_spill]] %s6239_s20 }
  0x28   :  { %s6259_s20 = sld [smem:[%s6987_s0 + %s6099_s15]]   ;;  %s6103_s15 = smov 27  }
  0x29   :  { %s6274_s16 = sld [smem:[%s6987_s0 + %s6102_s7]]   ;;  %s6106_s7 = smov 30  }
  0x2a   :  { %7033 = sst [smem:[#allocation48_spill]] %s6249_s12 }
  0x2b   :  { %s6269_s12 = sld [smem:[%s6987_s0 + %s6101_s28]]  }
  0x2c   :  { %7035 = sst [smem:[#allocation50_spill]] %s6264_s17 }
  0x2d   :  { %s6279_s22 = sld [smem:[%s6987_s0 + %s6103_s15]]  }
  0x2e   :  { %7034 = sst [smem:[#allocation49_spill]] %s6259_s20  ;;  %s6107_s20 = smov 31  }
  0x2f   :  { %7037 = sst [smem:[#allocation52_spill]] %s6274_s16 }
  0x30   :  { %s6284_s28 = sld [smem:[%s6987_s0 + %s6104_s23]]  }
  0x31   :  { %7036 = sst [smem:[#allocation51_spill]] %s6269_s12 }
  0x32   :  { %s6289_s10 = sld [smem:[%s6987_s0 + %s6105_s1]]  }
  0x33   :  { %s6294_s3 = sld [smem:[%s6987_s0 + %s6106_s7]]  }
  0x34   :  { %s6299_s5 = sld [smem:[%s6987_s0 + %s6107_s20]]  }
  0x35   :  { %72 = sst [smem:[#allocation2]] %s6199_s24 }
  0x36   :  { %7038 = sst [smem:[#allocation53_spill]] %s6284_s28 }
  0x37   :  { %s6304_s28 = sld [smem:[%s6987_s0 + %s6108_s13]]  }
  0x38   :  { %7039 = sst [smem:[#allocation54_spill]] %s6289_s10 }
  0x39   :  { %7040 = sst [smem:[#allocation55_spill]] %s6294_s3 }
  0x3a   :  { %7041 = sst [smem:[#allocation56_spill]] %s6299_s5 }
  0x3b   :  { %s6309_s10 = sld [smem:[%s6987_s0 + %s6109_s14]]  }
  0x3c   :  { %73 = sst [smem:[#allocation3]] %s6224_s27 }
  0x41   :  { %7042 = sst [smem:[#allocation57_spill]] %s6309_s10 }
  0x42   :  { %74 = vsyncpa [#allocation5], 0 }
  0x43   :  { %76 = vsyncpa [#allocation5 + $0x1], 0 }
  0x44   :  { %77 = vsyncpa [#allocation8], 0 }
  0x45   :  { %78 = vsyncpa [#allocation11], 0 }
  0x46   :  { %79 = vsyncpa [#allocation14], 0 }
  0x47   :  { %80 = vsyncpa [#allocation17], 0 }
  0x48   :  { %81 = vsyncpa [#allocation20], 0 }
  0x49   :  { %82 = vsyncpa [#allocation23], 0 }
  0x4a   :  { %83 = vsyncpa [#allocation6], 0 }
  0x4b   :  { %85 = vsyncpa [#allocation6 + $0x1], 0  ;;  %s6313_s8 = smov 0   ;;  %s6315_s7 = smov 0  }
  0x4c   :  { %s6317_s11 = smov 0   ;;  %s6319_s0 = smov 0  }
  0x4d LB: > { %s7043_s5 = sld [smem:[#allocation56_spill]]  ;;  %s6110_s24 = smov [#allocation7]   ;;  %s6067_s7 = sphi %s6315_s7, %s7101_s7   ;;  %s6063_s8 = sphi %s6313_s8, %s7100_s8   ;;  %s6075_s0 = sphi %s6319_s0, %s7103_s0   ;;  %s6071_s11 = sphi %s6317_s11, %s7102_s11  }
  0x4e   : > { %s7044_s9 = sld [smem:[#allocation34_spill]]  ;;  %s853_s27 = sshll.u32 %s6110_s24, 4  ;;  %s854_s27 = int_to_ptr.vmem [resolvable:$true] %s853_s27 }
  0x4f   : > { %s6334_s20 = sadd.s32 4294967295, %s6075_s0   ;;  %p4972_p0 = scmp.ge.s32.totalorder %s6075_s0, 1 }
  0x50   : > { %p6999_p1 = scmp.eq.s32.totalorder %s6334_s20, 0  ;;  %p840_p2 = scmp.lt.s32.totalorder %s6075_s0, 3 }
  0x51   : > { %s6111_s18 = smov [#allocation10]   ;;  %s6112_s23 = smov [#allocation13]  }
  0x52   : > { %p6339_p3 = pnand %p4972_p0, %p840_p2  ;;  %s893_s13 = sshll.u32 %s6111_s18, 4  ;;  %s6346_s13 = int_to_ptr.vmem [resolvable:$true] %s893_s13 }
  0x53   : > { %s924_s26 = sshll.u32 %s6112_s23, 4  ;;  %s6113_s1 = smov [#allocation16]   ;;  %s6354_s26 = int_to_ptr.vmem [resolvable:$true] %s924_s26 }
  0x54   : > { %s7045_s15 = scalar_select %p6339_p3, 1, 0 }
  0x55   : > { %p5437_p5 = pneg %p6339_p3  ;;  %s6356_s2 = sshll.u32 %s6113_s1, 4  ;;  %s953_s2 = int_to_ptr.vmem [resolvable:$true] %s6356_s2 }
  0x56   : > { %s5684_s18 = scalar_lea.vmem %s854_s27, 16  ;;  %s5691_s23 = scalar_lea.vmem %s854_s27, 32 }
  0x57   : > { %p6350_p6 = pnand %p5437_p5, %p6999_p1  ;;  %p5685_p8 = scmp.ne.s32.totalorder %s854_s27, %s5684_s18 }
  0x58   : > { %p5692_p11 = scmp.lt.s32.totalorder %s854_s27, %s854_s27  ;;  %p5693_p12 = scmp.lt.s32.totalorder %s5691_s23, %s5684_s18 }
  0x59   : > { %p6360_p7 = pneg %p6350_p6 }
  0x5a   : > { %p5694_p13 = por %p5693_p12, %p5692_p11 }
  0x5b   : > { %p5687_p9 = pnand %p5685_p8, %p6360_p7 }
  0x5d   : > { %p5688_p10 = pneg %p5687_p9 }
  0x5f   : > { %p5695_p0 = pnand %p5694_p13, %p5688_p10 }
  0x61   : > { %5698 = shalt.err (!%p5695_p0)
}
  0x62   : > { %5440 = dma.hbm_to_vmem [thread:$0]  (!%p6350_p6), %s6169_s25, 16, %s854_s27, [#allocation8]  }
  0x63   : > { %s5710_s1 = scalar_lea.vmem %s6346_s13, 16  ;;  %s5717_s10 = scalar_lea.vmem %s6346_s13, 32 }
  0x64   : > { %p5711_p2 = scmp.ne.s32.totalorder %s6346_s13, %s5710_s1  ;;  %p5718_p9 = scmp.lt.s32.totalorder %s6346_s13, %s6346_s13 }
  0x65   : > { %p5719_p11 = scmp.lt.s32.totalorder %s5717_s10, %s5710_s1 }
  0x66   : > { %p5713_p5 = pnand %p5711_p2, %p6360_p7 }
  0x67   : > { %p5720_p10 = por %p5719_p11, %p5718_p9 }
  0x68   : > { %p5714_p8 = pneg %p5713_p5 }
  0x6a   : > { %p5721_p12 = pnand %p5720_p10, %p5714_p8 }
  0x6c   : > { %5724 = shalt.err (!%p5721_p12)
}
  0x6d   : > { %s7048_s6 = sld [smem:[#allocation43_spill]]  ;;  %s5736_s27 = scalar_lea.vmem %s6354_s26, 16 }
  0x6e   : > { %p5737_p13 = scmp.ne.s32.totalorder %s6354_s26, %s5736_s27  ;;  %s5743_s18 = scalar_lea.vmem %s6354_s26, 32 }
  0x6f   : > { %p5744_p5 = scmp.lt.s32.totalorder %s6354_s26, %s6354_s26  ;;  %p5745_p8 = scmp.lt.s32.totalorder %s5743_s18, %s5736_s27 }
  0x70   : > { %p5739_p0 = pnand %p5737_p13, %p6360_p7 }
  0x71   : > { %p5746_p9 = por %p5745_p8, %p5744_p5 }
  0x72   : > { %p5740_p2 = pneg %p5739_p0 }
  0x73   : > { %5446 = dma.hbm_to_vmem [thread:$0]  (!%p6350_p6), %s7048_s6, 16, %s6346_s13, [#allocation11]  }
  0x74   : > { %p5747_p11 = pnand %p5746_p9, %p5740_p2 }
  0x76   : > { %5750 = shalt.err (!%p5747_p11)
}
  0x77   : > { %5452 = dma.hbm_to_vmem [thread:$0]  (!%p6350_p6), %s6234_s21, 16, %s6354_s26, [#allocation14]  }
  0x78   : > { %s6114_s10 = smov [#allocation19]   ;;  %s5762_s23 = scalar_lea.vmem %s953_s2, 16 }
  0x79   : > { %s976_s13 = sshll.u32 %s6114_s10, 4  ;;  %p5763_p10 = scmp.ne.s32.totalorder %s953_s2, %s5762_s23  ;;  %s977_s13 = int_to_ptr.vmem [resolvable:$true] %s976_s13 }
  0x7a   : > { %s5769_s1 = scalar_lea.vmem %s953_s2, 32  ;;  %p5770_p0 = scmp.lt.s32.totalorder %s953_s2, %s953_s2 }
  0x7b   : > { %p5765_p12 = pnand %p5763_p10, %p6360_p7  ;;  %p5771_p5 = scmp.lt.s32.totalorder %s5769_s1, %s5762_s23 }
  0x7d   : > { %p5766_p13 = pneg %p5765_p12  ;;  %p5772_p2 = por %p5771_p5, %p5770_p0 }
  0x7f   : > { %p5773_p8 = pnand %p5772_p2, %p5766_p13 }
  0x81   : > { %5776 = shalt.err (!%p5773_p8)
}
  0x82   : > { %5458 = dma.hbm_to_vmem [thread:$0]  (!%p6350_p6), %s6254_s19, 16, %s953_s2, [#allocation17]  }
  0x83   : > { %s5788_s26 = scalar_lea.vmem %s977_s13, 256  ;;  %p5796_p1 = scmp.lt.s32.totalorder %s977_s13, %s977_s13 }
  0x84   : > { %p5789_p9 = scmp.ne.s32.totalorder %s977_s13, %s5788_s26  ;;  %p5797_p10 = scmp.lt.s32.totalorder %s5788_s26, %s5788_s26 }
  0x86   : > { %p5791_p11 = pnand %p5789_p9, %p6360_p7  ;;  %p5798_p12 = por %p5797_p10, %p5796_p1 }
  0x88   : > { %p5792_p4 = pneg %p5791_p11 }
  0x8a   : > { %p5799_p3 = pnand %p5798_p12, %p5792_p4 }
  0x8c   : > { %5802 = shalt.err (!%p5799_p3)
}
  0x8d   : > { %s6115_s27 = smov 64   ;;  %s7049_s12 = sld [smem:[#allocation51_spill]] }
  0x8e   : > { %s6116_s18 = smov 4   ;;  %s6117_s10 = smov [#allocation9]  }
  0x8f   : > { %s864_s2 = sshll.u32 %s6117_s10, 4  ;;  %s6118_s23 = smov [#allocation12]   ;;  %s865_s2 = int_to_ptr.vmem [resolvable:$true] %s864_s2 }
  0x90   : > { %s913_s1 = sshll.u32 %s6118_s23, 4  ;;  %s5814_s6 = scalar_lea.vmem %s865_s2, 16  ;;  %s914_s1 = int_to_ptr.vmem [resolvable:$true] %s913_s1 }
  0x91   : > { %p5815_p13 = scmp.ne.s32.totalorder %s865_s2, %s5814_s6  ;;  %s5821_s26 = scalar_lea.vmem %s865_s2, 32 }
  0x92   : > { %p5822_p1 = scmp.lt.s32.totalorder %s865_s2, %s865_s2  ;;  %p5823_p3 = scmp.lt.s32.totalorder %s5821_s26, %s5814_s6 }
  0x93   : > { %5464 = dma.hbm_to_vmem [thread:$0]  (!%p6350_p6), %s7049_s12, 256, %s977_s13, [#allocation20], %s6115_s27, %s6115_s27, %s6116_s18  }
  0x94   : > { %p5817_p0 = pnand %p5815_p13, %p6360_p7  ;;  %p5824_p4 = por %p5823_p3, %p5822_p1 }
  0x96   : > { %p5818_p5 = pneg %p5817_p0 }
  0x98   : > { %p5825_p2 = pnand %p5824_p4, %p5818_p5 }
  0x9a   : > { %5828 = shalt.err (!%p5825_p2)
}
  0x9b   : > { %5443 = dma.hbm_to_vmem [thread:$0]  (!%p6350_p6), %s6174_s29, 16, %s865_s2, [#allocation8]  }
  0x9c   : > { %s5840_s13 = scalar_lea.vmem %s914_s1, 16  ;;  %s5847_s27 = scalar_lea.vmem %s914_s1, 32 }
  0x9d   : > { %p5841_p8 = scmp.ne.s32.totalorder %s914_s1, %s5840_s13  ;;  %p5848_p10 = scmp.lt.s32.totalorder %s914_s1, %s914_s1 }
  0x9e   : > { %p5849_p12 = scmp.lt.s32.totalorder %s5847_s27, %s5840_s13 }
  0x9f   : > { %p5843_p9 = pnand %p5841_p8, %p6360_p7 }
  0xa0   : > { %p5850_p13 = por %p5849_p12, %p5848_p10 }
  0xa1   : > { %p5844_p11 = pneg %p5843_p9 }
  0xa3   : > { %p5851_p0 = pnand %p5850_p13, %p5844_p11 }
  0xa5   : > { %5854 = shalt.err (!%p5851_p0)
}
  0xa6   : > { %s7050_s4 = sld [smem:[#allocation46_spill]]  ;;  %s6119_s6 = smov [#allocation15]  }
  0xa7   : > { %s938_s18 = sshll.u32 %s6119_s6, 4  ;;  %s6120_s10 = smov [#allocation18]   ;;  %s939_s18 = int_to_ptr.vmem [resolvable:$true] %s938_s18 }
  0xa8   : > { %s966_s2 = sshll.u32 %s6120_s10, 4  ;;  %s5866_s23 = scalar_lea.vmem %s939_s18, 16  ;;  %s967_s2 = int_to_ptr.vmem [resolvable:$true] %s966_s2 }
  0xa9   : > { %p5867_p5 = scmp.ne.s32.totalorder %s939_s18, %s5866_s23  ;;  %s5873_s26 = scalar_lea.vmem %s939_s18, 32 }
  0xaa   : > { %p5874_p4 = scmp.lt.s32.totalorder %s939_s18, %s939_s18  ;;  %p5875_p2 = scmp.lt.s32.totalorder %s5873_s26, %s5866_s23 }
  0xab   : > { %p5869_p1 = pnand %p5867_p5, %p6360_p7 }
  0xac   : > { %5449 = dma.hbm_to_vmem [thread:$0]  (!%p6350_p6), %s7050_s4, 16, %s914_s1, [#allocation11]  }
  0xad   : > { %p5870_p3 = pneg %p5869_p1  ;;  %p5876_p8 = por %p5875_p2, %p5874_p4 }
  0xaf   : > { %p5877_p9 = pnand %p5876_p8, %p5870_p3 }
  0xb1   : > { %5880 = shalt.err (!%p5877_p9)
}
  0xb2   : > { %5455 = dma.hbm_to_vmem [thread:$0]  (!%p6350_p6), %s6244_s30, 16, %s939_s18, [#allocation14]  }
  0xb3   : > { %s5892_s1 = scalar_lea.vmem %s967_s2, 16  ;;  %s5899_s13 = scalar_lea.vmem %s967_s2, 32 }
  0xb4   : > { %p5893_p11 = scmp.ne.s32.totalorder %s967_s2, %s5892_s1  ;;  %p5900_p13 = scmp.lt.s32.totalorder %s967_s2, %s967_s2 }
  0xb5   : > { %p5901_p0 = scmp.lt.s32.totalorder %s5899_s13, %s5892_s1 }
  0xb6   : > { %p5895_p10 = pnand %p5893_p11, %p6360_p7 }
  0xb7   : > { %p5902_p5 = por %p5901_p0, %p5900_p13 }
  0xb8   : > { %p5896_p12 = pneg %p5895_p10 }
  0xba   : > { %p5903_p1 = pnand %p5902_p5, %p5896_p12 }
  0xbc   : > { %5906 = shalt.err (!%p5903_p1)
}
  0xbd   : > { %s7051_s17 = sld [smem:[#allocation50_spill]]  ;;  %s6121_s27 = smov [#allocation21]  }
  0xbe   : > { %s990_s6 = sshll.u32 %s6121_s27, 4  ;;  %s6122_s18 = smov [#allocation22]   ;;  %s991_s6 = int_to_ptr.vmem [resolvable:$true] %s990_s6 }
  0xbf   : > { %s1001_s10 = sshll.u32 %s6122_s18, 4  ;;  %s5918_s23 = scalar_lea.vmem %s991_s6, 16  ;;  %s1002_s10 = int_to_ptr.vmem [resolvable:$true] %s1001_s10 }
  0xc0   : > { %p5919_p3 = scmp.ne.s32.totalorder %s991_s6, %s5918_s23  ;;  %s5925_s26 = scalar_lea.vmem %s991_s6, 32 }
  0xc1   : > { %p5926_p8 = scmp.lt.s32.totalorder %s991_s6, %s991_s6  ;;  %p5927_p9 = scmp.lt.s32.totalorder %s5925_s26, %s5918_s23 }
  0xc2   : > { %p5921_p4 = pnand %p5919_p3, %p6360_p7 }
  0xc3   : > { %5461 = dma.hbm_to_vmem [thread:$0]  (!%p6350_p6), %s7051_s17, 16, %s967_s2, [#allocation17]  }
  0xc4   : > { %p5922_p2 = pneg %p5921_p4  ;;  %p5928_p11 = por %p5927_p9, %p5926_p8 }
  0xc6   : > { %p5929_p10 = pnand %p5928_p11, %p5922_p2 }
  0xc8   : > { %5932 = shalt.err (!%p5929_p10)
}
  0xc9   : > { %s7052_s16 = sld [smem:[#allocation52_spill]]  ;;  %s5944_s2 = scalar_lea.vmem %s1002_s10, 16 }
  0xca   : > { %p5945_p12 = scmp.ne.s32.totalorder %s1002_s10, %s5944_s2  ;;  %s5951_s1 = scalar_lea.vmem %s1002_s10, 32 }
  0xcb   : > { %p5952_p5 = scmp.lt.s32.totalorder %s1002_s10, %s1002_s10  ;;  %p5953_p1 = scmp.lt.s32.totalorder %s5951_s1, %s5944_s2 }
  0xcc   : > { %p5947_p13 = pnand %p5945_p12, %p6360_p7 }
  0xcd   : > { %p5954_p3 = por %p5953_p1, %p5952_p5 }
  0xce   : > { %p5948_p0 = pneg %p5947_p13 }
  0xcf   : > { %5467 = dma.hbm_to_vmem [thread:$0]  (!%p6350_p6), %s7052_s16, 16, %s991_s6, [#allocation20]  }
  0xd0   : > { %p5955_p4 = pnand %p5954_p3, %p5948_p0 }
  0xd2   : > { %5958 = shalt.err (!%p5955_p4)
}
  0xd3   : > { %5470 = dma.hbm_to_vmem [thread:$0]  (!%p6350_p6), %s6279_s22, 16, %s1002_s10, [#allocation23]  }
  0xd4   : > { %s4971_s24 = sadd.s32 4294967294, %s6075_s0   ;;  %s6434_s13 = sadd.s32 1, %s6075_s0  }
  0xd5   : > { %s124_s14 = sadd.s32 1, %s6071_s11  ;;  %s121_s27 = ssub.s32 %s6075_s0, %s6434_s13 }
  0xd6   : > { %p131_p7 = scmp.ne.s32.totalorder %s6071_s11, %s6067_s7  ;;  %p122_p2 = scmp.eq.s32.totalorder %s121_s27, 0 }
  0xd7   : > { %p132_p8 = scmp.eq.s32.totalorder %s6075_s0, 0  ;;  %p137_p9 = scmp.ne.s32.totalorder %s6067_s7, %s6063_s8 }
  0xd8   : > { %p827_p11 = scmp.eq.s32.totalorder %s6334_s20, 1  ;;  %p7053_p12 = scmp.eq.s32.totalorder %s6334_s20, 0 }
  0xd9   : > { %s6446_s6 = scalar_select %p122_p2, %s6071_s11, %s124_s14  }
  0xda   : > { %p133_p10 = por %p132_p8, %p131_p7  ;;  %p6450_p13 = por %p7053_p12, %p137_p9 }
  0xdb   : > { %p6454_p6 = por %p827_p11, %p131_p7  ;;  %p833_p0 = scmp.eq.s32.totalorder %s4971_s24, 1 }
  0xdc   : > { %s7054_s18 = scalar_select %p6450_p13, 1, 0 }
  0xdd   : > { %s7055_s10 = scalar_select %p6454_p6, 1, 0 }
  0xde   : > { %p5490_p5 = scmp.lt.s32.totalorder %s6075_s0, 2  ;;  %s1034_s23 = sand.u32 1, %s6071_s11  }
  0xdf   : > { %p6460_p1 = por %p833_p0, %p137_p9  ;;  %s4985_s2 = sshll.u32 %s1034_s23, 2 }
  0xe0   : > { %s4986_s1 = sshll.u32 %s6075_s0, 6  ;;  %s1038_s27 = scalar_lea.vmem [#allocation4], %s4985_s2 }
  0xe1   : > { %s7056_s26 = scalar_select %p6460_p1, 1, 0 }
  0xe2   : > { %s6466_s14 = scalar_lea.hbm %s7044_s9, %s4986_s1  ;;  %s1045_s4 = sshll.u32 %s1038_s27, 4  ;;  %s1046_s4 = int_to_ptr.vmem [resolvable:$true] %s1045_s4 }
  0xe3   : > { %p6468_p3 = pnand %p5490_p5, %p133_p10  ;;  %s1035_s24 = scalar_lea.sflag [#allocation5], %s1034_s23 }
  0xe4   : > { %s5959_s16 = scalar_lea.hbm %s6466_s14, 64  ;;  %s5964_s1 = scalar_lea.hbm %s7044_s9, 128 }
  0xe5   : > { %s7057_s12 = scalar_select %p6468_p3, 1, 0 }
  0xe6   : > { %p5960_p4 = scmp.ne.s32.totalorder %s6466_s14, %s5959_s16  ;;  %p5961_p7 = pneg %p6468_p3 }
  0xe7   : > { %p5965_p9 = scmp.lt.s32.totalorder %s6466_s14, %s7044_s9  ;;  %p5966_p11 = scmp.lt.s32.totalorder %s5964_s1, %s5959_s16 }
  0xe8   : > { %p5962_p2 = pnand %p5961_p7, %p5960_p4 }
  0xe9   : > { %p5967_p12 = por %p5966_p11, %p5965_p9 }
  0xea   : > { %p5963_p8 = pneg %p5962_p2 }
  0xec   : > { %p5968_p0 = pnand %p5967_p12, %p5963_p8 }
  0xee   : > { %5971 = shalt.err (!%p5968_p0)
}
  0xef   : > { %s5972_s2 = scalar_lea.vmem %s1046_s4, 64  ;;  %s6123_s27 = smov [#allocation4]  }
  0xf0   : > { %p5973_p10 = scmp.ne.s32.totalorder %s1046_s4, %s5972_s2  ;;  %s5977_s17 = sshll.u32 %s6123_s27, 4  ;;  %s5978_s17 = int_to_ptr.vmem [resolvable:$false] %s5977_s17 }
  0xf1   : > { %s5979_s23 = scalar_lea.vmem %s5978_s17, 128  ;;  %p5980_p6 = scmp.lt.s32.totalorder %s1046_s4, %s5978_s17 }
  0xf2   : > { %p5975_p5 = pnand %p5973_p10, %p5961_p7  ;;  %p5981_p13 = scmp.lt.s32.totalorder %s5979_s23, %s5972_s2 }
  0xf4   : > { %p5976_p1 = pneg %p5975_p5  ;;  %p5982_p3 = por %p5981_p13, %p5980_p6 }
  0xf6   : > { %p5983_p4 = pnand %p5982_p3, %p5976_p1 }
  0xf8   : > { %5986 = shalt.err (!%p5983_p4)
}
  0xf9   : > { %p7058_p2 = scmp.ne.s32.totalorder %s7057_s12, 0  ;;  %p7059_p8 = scmp.ne.s32.totalorder %s7045_s15, 0 }
  0xfa   : > { %s6485_s16 = sand.u32 (!%p7059_p8), 1, %s6067_s7   ;;  %p7060_p13 = scmp.ne.s32.totalorder (!%p7059_p8), %s7054_s18, 0 }
  0xfb   : > { %5474 = dma.hbm_to_vmem [thread:$0]  (!%p7058_p2), %s6466_s14, 64, %s1046_s4, %s1035_s24  }
  0xfc   : > { %1075 = sbr.rel (%p7059_p8) target bundleno = 5197 (0x144d), region = 152  ;;  %s4988_s1 = sshll.u32 (!%p7059_p8), %s6485_s16, 2 }
  0xfd   : > { %s1078_s27 = scalar_lea.sflag (!%p7059_p8), [#allocation5], %s6485_s16  ;;  %s6489_s17 = scalar_lea.vmem (!%p7059_p8), [#allocation4], %s4988_s1 }
 0x101   : > { %6030 = dma.done.wait (%p7060_p13), %s1078_s27, 64  }
 0x102   : > { %6032 = vsyncadd (%p7060_p13), %s1078_s27, 4294967232  ;;  %p7061_p6 = scmp.eq.s32.totalorder %s6334_s20, 0 }
 0x104   : > { %6034 = dma.done.wait (%p7061_p6), [#allocation8], 32   ;;  %p7062_p1 = pmov %p7061_p6 }
 0x106   : > { %6036 = vsyncadd (%p7062_p1), [#allocation8], 4294967264  ;;  %p7063_p3 = pmov %p7062_p1 }
 0x107   : > { %p7064_p7 = pmov %p7062_p1 }
 0x108   : > { %6038 = dma.done.wait (%p7063_p3), [#allocation11], 32  }
 0x109   : > { %6040 = vsyncadd (%p7064_p7), [#allocation11], 4294967264  ;;  %p7065_p9 = pmov %p7062_p1 }
 0x10a   : > { %p7066_p11 = pmov %p7062_p1 }
 0x10b   : > { %6042 = dma.done.wait (%p7065_p9), [#allocation14], 32  }
 0x10c   : > { %6044 = vsyncadd (%p7066_p11), [#allocation14], 4294967264  ;;  %p7067_p12 = pmov %p7062_p1 }
 0x10d   : > { %p7068_p0 = pmov %p7062_p1 }
 0x10e   : > { %6046 = dma.done.wait (%p7067_p12), [#allocation17], 32  }
 0x10f   : > { %6048 = vsyncadd (%p7068_p0), [#allocation17], 4294967264  ;;  %p7069_p10 = pmov %p7068_p0 }
 0x110   : > { %p7070_p5 = pmov %p7068_p0 }
 0x111   : > { %6050 = dma.done.wait (%p7069_p10), [#allocation20], 272  }
 0x112   : > { %6052 = vsyncadd (%p7070_p5), [#allocation20], 4294967024  ;;  %p7071_p4 = pmov %p7068_p0 }
 0x113   : > { %p7072_p2 = pmov %p7068_p0 }
 0x114   : > { %6054 = dma.done.wait (%p7071_p4), [#allocation23], 16  }
 0x115   : > { %6056 = vsyncadd (%p7072_p2), [#allocation23], 4294967280  ;;  %s7073_s12 = sld [smem:[#allocation33_spill]]  ;;  %p1224_p8 = scmp.lt.s32.totalorder %s6334_s20, 1  ;;  %vm1250_vm0 = vcmask 261120   ;;  %v6124_v8 = vmov 0.0   ;;  %v1470_v36 = vlaneseq }
 0x116   : > { %s7074_s4 = sld [smem:[#allocation38_spill]]  ;;  %5189 = vmatprep.subr.bf16.mxu1 %v6124_v8  ;;  %vm6125_vm1 = vmmov 0   ;;  %5223 = vmatprep.subr.mxu0 %v6124_v8  ;;  %v5005_v14 = vld [vmem:[#allocation7] ss:$0 sm:$0xff]  ;;  %v5006_v16 = vld [vmem:[#allocation9] ss:$0 sm:$0xff] }
 0x117   : > { %s1225_s15 = scalar_select %p1224_p8, %s6334_s20, 1  ;;  %5193 = vmatprep.mubr.msk.bf16.mxu1 %vm6125_vm1, %v6124_v8  ;;  %5225 = vmatprep.mubr.msk.f32.mxu0 %vm6125_vm1, %v6124_v8  ;;  %v1242_v22 = vld [vmem:[%s6489_s17] sm:$0xf]  ;;  %v6129_v34 = vmov 1983009808   ;;  %v1471_v40 = vshrl.u32 %v1470_v36, 7 }
 0x118   : > { %s7075_s24 = sld [smem:[#allocation39_spill]]  ;;  %s7007_s23 = smov 104   ;;  %v1468_v35 = vunpack.c.l.s4 %v6129_v34  ;;  %v6130_v37 = vmov 1934713408   ;;  %vm1893_vm2 = vcmask 64512   ;;  %vm2683_vm3 = vcmask 130048  }
 0x119   : > { %s6521_s18 = sshll.u32 %s1225_s15, 3  ;;  %s7076_s2 = sld [smem:[#allocation40_spill]]  ;;  %v1500_v38 = vunpack.c.l.s4 %v6130_v37  ;;  %vm2685_vm4 = vcmask 195584  }
 0x11a   : > { %s7013_s1 = smov 120   ;;  %s7009_s27 = smov 112   ;;  %v1469_v39 = vunpack.c.0.s8 %v1468_v35 }
 0x11b   : > { %s1227_s14 = scalar_lea.vmem %s7073_s12, %s6521_s18  ;;  %v1501_v43 = vunpack.c.0.s8 %v1500_v38  ;;  %s7077_s17 = sld [smem:[#allocation35_spill]] }
 0x11c   : > { %v6525_v0 = vld [vmem:[%s1227_s14] sm:$0xff]  ;;  %v5593_v7 = vld [vmem:[%s7074_s4 + $0x8] sm:$0xff]   ;;  %v6565_v44 = vsub.s32 %v1469_v39, %v1471_v40  ;;  %s7078_s15 = sld [smem:[#allocation36_spill]]  ;;  %p7097_p6 = scmp.ne.s32.totalorder %s7055_s10, 0 }
 0x11d   : > { %v1251_v1 = vsel %vm1250_vm0, %v6525_v0, 0.0  ;;  %5190 = vmatpush3.bf16.msra.mxu1 %v5593_v7  ;;  %v5594_v9 = vld [vmem:[%s7074_s4] sm:$0xff]   ;;  %v6567_v50 = vsub.s32 %v1501_v43, %v1471_v40  ;;  %s7087_s4 = smov 104   ;;  %s7095_s3 = sld [smem:[#allocation55_spill]] }
 0x11e   : > { %1252 = vadd.xlane.f32.xlu0 %v1251_v1  ;;  %5191 = vmatprep.subr.bf16.mxu1 %v6124_v8  ;;  %v5595_v19 = vld [vmem:[%s7075_s24 + $0x8] sm:$0xff]   ;;  %v5596_v21 = vld [vmem:[%s7075_s24] sm:$0xff]  }
 0x11f   : > { %v5597_v28 = vld [vmem:[%s7076_s2 + $0x8] sm:$0xff]   ;;  %v5598_v31 = vld [vmem:[%s7076_s2] sm:$0xff]   ;;  %s7086_s2 = smov 112  }
 0x121   : > { %5192 = vmatpush3.bf16.msra.mxu1 %v5594_v9  ;;  %s1231_s12 = scalar_lea.vmem %s7077_s17, %s6521_s18  ;;  %s7079_s17 = sld [smem:[#allocation41_spill]] }
 0x122   : > { %5197 = vmatprep.subr.bf16.mxu1 %v6124_v8  ;;  %s1235_s14 = scalar_lea.vmem %s7078_s15, %s6521_s18  ;;  %s7005_s15 = smov 8  }
 0x1a7   : > { %v1253_v2 = vpop.xlane.xlu0 %1252 }
 0x1a8   : > { %v1255_v3 = vmul.f32 0.03125, %v1253_v2 }
 0x1aa   : > { %v1256_v4 = vsub.f32 %v6525_v0, %v1255_v3 }
 0x1ac   : > { %v1257_v5 = vmul.f32 %v1256_v4, %v1256_v4 }
 0x1ae   : > { %v1258_v6 = vsel %vm1250_vm0, %v1257_v5, 0.0 }
 0x1af   : > { %1259 = vadd.xlane.f32.xlu0 %v1258_v6 }
 0x238   : > { %v1260_v10 = vpop.xlane.xlu0 %1259 }
 0x239   : > { %v1261_v11 = vmul.f32 0.03125, %v1260_v10 }
 0x23b   : > { %v1262_v12 = vadd.f32 1e-05, %v1261_v11 }
 0x23d   : > { %5629 = vrsqrt.f32 %v1262_v12 }
 0x24a   : > { %v5630_v13 = vpop.eup %5629 }
 0x24b   : > { %v1264_v15 = vmul.f32 %v5630_v13, %v1256_v4 }
 0x24d   : > { %v1271_v17 = vmul.f32 %v5005_v14, %v1264_v15 }
 0x24f   : > { %v1278_v18 = vadd.f32 %v5006_v16, %v1271_v17 }
 0x251   : > { %v1279_v20 = vpack.c.bf16 %v1278_v18, %v1278_v18 }
 0x253   : > { %5194 = vmatmul.mubr.msk.bf16.vlgmr.msra.gmra.mxu1 %vm1250_vm0, %v1279_v20 }
 0x254   : > { %5198 = vmatpush3.bf16.msra.mxu1 %v5595_v19  ;;  %5201 = vmatprep.mubr.msk.bf16.mxu1 %vm6125_vm1, %v6124_v8 }
 0x255   : > { %5199 = vmatprep.subr.bf16.mxu1 %v6124_v8 }
 0x258   : > { %5200 = vmatpush3.bf16.msra.mxu1 %v5596_v21 }
 0x259   : > { %5205 = vmatprep.subr.bf16.mxu1 %v6124_v8 }
 0x25b   : > { %5202 = vmatmul.mubr.msk.bf16.vlgmr.msra.gmra.mxu1 %vm1250_vm0, %v1242_v22 }
 0x25c   : > { %5209 = vmatprep.mubr.msk.bf16.mxu1 %vm6125_vm1, %v6124_v8  ;;  %5206 = vmatpush3.bf16.msra.mxu1 %v5597_v28 }
 0x25d   : > { %5207 = vmatprep.subr.bf16.mxu1 %v6124_v8 }
 0x260   : > { %5208 = vmatpush3.bf16.msra.mxu1 %v5598_v31 }
 0x261   : > { %5213 = vmatprep.subr.mxu1 %v6124_v8 }
 0x263   : > { %5210 = vmatmul.mubr.msk.bf16.vlgmr.msra.gmra.mxu1 %vm1250_vm0, %v1242_v22 }
 0x264   : > { %5215 = vmatprep.mubr.msk.f32.mxu1 %vm6125_vm1, %v6124_v8 }
 0x313   : > { %v1333_v23 = vpop.f32.mrf.mxu1 }
 0x314   : > { %v1454_v33 = vmul.f32 0.35355338, %v1333_v23 }
 0x315   : > { %v5195_v24 = vpop.f32.mrf.mxu1 }
 0x317   : > { %v1336_v25 = vpop.f32.mrf.mxu1 }
 0x319   : > { %v5196_v26 = vpop.f32.mrf.mxu1 }
 0x31b   : > { %v1392_v27 = vpop.f32.mrf.mxu1 }
 0x31c   : > { %1608 = vrot.lane.b32.xlu0 %v1392_v27, %s7007_s23  ;;  %1602 = vrot.lane.b32.xlu1 %v1392_v27, %s7013_s1 }
 0x31d   : > { %v5203_v29 = vpop.f32.mrf.mxu1 }
 0x31f   : > { %v1395_v30 = vpop.f32.mrf.mxu1 }
 0x320   : > { %1605 = vrot.lane.b32.xlu1 %v1392_v27, %s7009_s27 }
 0x321   : > { %v5204_v32 = vpop.f32.mrf.mxu1 }
 0x324   : > { %1456 = vrot.lane.b32.xlu1 %v1454_v33, %s7013_s1 }
 0x328   : > { %1459 = vrot.lane.b32.xlu1 %v1454_v33, %s7009_s27 }
 0x32c   : > { %1462 = vrot.lane.b32.xlu1 %v1454_v33, %s7007_s23 }
 0x38e   : > { %v1609_v41 = vpop.permute.xlu0 %1608  ;;  %v1603_v42 = vpop.permute.xlu1 %1602 }
 0x38f   : > { %v1627_v45 = vcombine.low %v1603_v42, %v1609_v41  ;;  %v1628_v46 = vcombine.high %v1603_v42, %v1609_v41 }
 0x391   : > { %v1635_v51 = vrot.slane %v1627_v45, %v6565_v44  ;;  %v1642_v52 = vrot.slane %v1628_v46, %v6565_v44 }
 0x392   : > { %v1606_v47 = vpop.permute.xlu1 %1605 }
 0x393   : > { %v1611_v48 = vcombine.low %v1392_v27, %v1606_v47  ;;  %v1612_v49 = vcombine.high %v1392_v27, %v1606_v47 }
 0x395   : > { %v1619_v53 = vrot.slane %v1611_v48, %v6565_v44  ;;  %v1626_v54 = vrot.slane %v1612_v49, %v6565_v44 }
 0x396   : > { %v1457_v55 = vpop.permute.xlu1 %1456 }
 0x397   : > { %v1643_v56 = vcombine.low %v1619_v53, %v1635_v51  ;;  %v1644_v57 = vcombine.high %v1619_v53, %v1635_v51  ;;  %v1659_v58 = vcombine.low %v1626_v54, %v1642_v52  ;;  %v1660_v59 = vcombine.high %v1626_v54, %v1642_v52 }
 0x399   : > { %v1651_v60 = vrot.slane %v1643_v56, %v6567_v50  ;;  %v1658_v61 = vrot.slane %v1644_v57, %v6567_v50  ;;  %v1667_v62 = vrot.slane %v1659_v58, %v6567_v50  ;;  %v1674_v63 = vrot.slane %v1660_v59, %v6567_v50 }
 0x39a   : > { %v1460_v1 = vpop.permute.xlu1 %1459 }
 0x39b   : > { %v1679_v2 = vcombine.low %v1651_v60, %v1658_v61  ;;  %v5018_v3 = vcombine.high %v1651_v60, %v1658_v61  ;;  %v1695_v4 = vcombine.low %v1667_v62, %v1674_v63  ;;  %v5019_v5 = vcombine.high %v1667_v62, %v1674_v63  ;;  %v6621_v62 = vpop.f32.mrf.mxu1 }
 0x39c   : > { %v1465_v6 = vcombine.low %v1454_v33, %v1460_v1  ;;  %v1466_v7 = vcombine.high %v1454_v33, %v1460_v1 }
 0x39d   : > { %v1686_v9 = vrot.slane %v1679_v2, %v6565_v44  ;;  %v1694_v10 = vrot.slane %v5018_v3, %v6565_v44  ;;  %v1702_v11 = vrot.slane %v1695_v4, %v6565_v44  ;;  %v1710_v12 = vrot.slane %v5019_v5, %v6565_v44  ;;  %v5211_v63 = vpop.f32.mrf.mxu1  ;;  %v1243_v3 = vld [vmem:[%s1231_s12] sm:$0xff]  ;;  %s7004_s12 = smov 24  }
 0x39e   : > { %v1463_v13 = vpop.permute.xlu1 %1462  ;;  %v1473_v18 = vrot.slane %v1465_v6, %v6565_v44  ;;  %v1480_v19 = vrot.slane %v1466_v7, %v6565_v44 }
 0x39f   : > { %v1711_v14 = vcombine.low %v1686_v9, %v1694_v10  ;;  %v1727_v15 = vcombine.low %v1702_v11, %v1710_v12  ;;  %v1481_v16 = vcombine.low %v1457_v55, %v1463_v13  ;;  %v1482_v17 = vcombine.high %v1457_v55, %v1463_v13  ;;  %v1451_v1 = vpop.f32.mrf.mxu1 }
 0x3a0   : > { %v1712_v20 = vcombine.high %v1686_v9, %v1694_v10  ;;  %v1728_v21 = vcombine.high %v1702_v11, %v1710_v12 }
 0x3a1   : > { %v1489_v22 = vrot.slane %v1481_v16, %v6565_v44  ;;  %v1496_v23 = vrot.slane %v1482_v17, %v6565_v44  ;;  %v1719_v24 = vrot.slane %v1711_v14, %v6567_v50  ;;  %v1735_v25 = vrot.slane %v1727_v15, %v6567_v50  ;;  %v5212_v2 = vpop.f32.mrf.mxu1 }
 0x3a2   : > { %v1726_v26 = vrot.slane %v1712_v20, %v6567_v50  ;;  %v1742_v27 = vrot.slane %v1728_v21, %v6567_v50 }
 0x3a3   : > { %v1497_v28 = vcombine.low %v1473_v18, %v1489_v22  ;;  %v1498_v29 = vcombine.high %v1473_v18, %v1489_v22  ;;  %v1513_v30 = vcombine.low %v1480_v19, %v1496_v23  ;;  %v1514_v31 = vcombine.high %v1480_v19, %v1496_v23 }
 0x3a4   : > { %v1743_v32 = vcombine.low %v1719_v24, %v1735_v25  ;;  %v1745_v33 = vcombine.low %v1726_v26, %v1742_v27  ;;  %v1744_v58 = vcombine.high %v1719_v24, %v1735_v25  ;;  %v1746_v60 = vcombine.high %v1726_v26, %v1742_v27 }
 0x3a5   : > { %v1505_v34 = vrot.slane %v1497_v28, %v6567_v50  ;;  %v1512_v35 = vrot.slane %v1498_v29, %v6567_v50  ;;  %v1521_v36 = vrot.slane %v1513_v30, %v6567_v50  ;;  %v1528_v37 = vrot.slane %v1514_v31, %v6567_v50 }
 0x3a6   : > { %5214 = vmatpush3.xpose.msk.msra.mxu1 %vm1893_vm2, %v1743_v32  ;;  %5224 = vmatpush3.xpose.msk.msra.mxu0 %vm1893_vm2, %v1745_v33 }
 0x3a7   : > { %v1533_v38 = vcombine.low %v1505_v34, %v1512_v35  ;;  %v5016_v39 = vcombine.high %v1505_v34, %v1512_v35  ;;  %v1549_v40 = vcombine.low %v1521_v36, %v1528_v37  ;;  %v5017_v41 = vcombine.high %v1521_v36, %v1528_v37  ;;  %5218 = vmatprep.subr.mxu1 %v6124_v8 }
 0x3a8   : > { %5233 = vmatprep.subr.mxu0 %v6124_v8 }
 0x3a9   : > { %v1540_v42 = vrot.slane %v1533_v38, %v6565_v44  ;;  %v1548_v43 = vrot.slane %v5016_v39, %v6565_v44  ;;  %v1556_v45 = vrot.slane %v1549_v40, %v6565_v44  ;;  %v1564_v46 = vrot.slane %v5017_v41, %v6565_v44 }
 0x3ab   : > { %v1565_v47 = vcombine.low %v1540_v42, %v1548_v43  ;;  %v1581_v48 = vcombine.low %v1556_v45, %v1564_v46  ;;  %v1566_v49 = vcombine.high %v1540_v42, %v1548_v43  ;;  %v1582_v51 = vcombine.high %v1556_v45, %v1564_v46 }
 0x3ad   : > { %v1573_v52 = vrot.slane %v1565_v47, %v6567_v50  ;;  %v1589_v53 = vrot.slane %v1581_v48, %v6567_v50  ;;  %v1580_v54 = vrot.slane %v1566_v49, %v6567_v50  ;;  %v1596_v55 = vrot.slane %v1582_v51, %v6567_v50 }
 0x3af   : > { %v1597_v56 = vcombine.low %v1573_v52, %v1589_v53  ;;  %v1599_v57 = vcombine.low %v1580_v54, %v1596_v55  ;;  %v1598_v59 = vcombine.high %v1573_v52, %v1589_v53  ;;  %v1600_v61 = vcombine.high %v1580_v54, %v1596_v55 }
 0x3b1   : > { %5216 = vmatmul.mubr.msk.f32.vlgmr.msra.gmra.mxu1 %vm1893_vm2, %v1597_v56  ;;  %5226 = vmatmul.mubr.msk.f32.vlgmr.msra.gmra.mxu0 %vm1893_vm2, %v1599_v57 }
 0x3b2   : > { %5219 = vmatpush3.xpose.msk.msra.mxu1 %vm1893_vm2, %v1744_v58  ;;  %5220 = vmatprep.mubr.msk.f32.mxu1 %vm6125_vm1, %v6124_v8 }
 0x3b3   : > { %5228 = vmatprep.subr.mxu1 %v6124_v8  ;;  %5235 = vmatprep.mubr.msk.f32.mxu0 %vm6125_vm1, %v6124_v8 }
 0x3b5   : > { %5221 = vmatmul.mubr.msk.f32.vlgmr.msra.gmra.mxu1 %vm1893_vm2, %v1598_v59 }
 0x3b6   : > { %5229 = vmatpush3.xpose.msk.msra.mxu1 %vm1893_vm2, %v1746_v60  ;;  %5230 = vmatprep.mubr.msk.f32.mxu1 %vm6125_vm1, %v6124_v8 }
 0x3b7   : > { %5238 = vmatprep.subr.mxu1 %v6124_v8 }
 0x3b9   : > { %5231 = vmatmul.mubr.msk.f32.vlgmr.msra.gmra.mxu1 %vm1893_vm2, %v1600_v61 }
 0x3ba   : > { %5240 = vmatprep.mubr.msk.f32.mxu1 %vm6125_vm1, %v6124_v8 }
 0x471   : > { %v1966_v4 = vpop.f32.mrf.mxu1  ;;  %v2118_v5 = vpop.f32.mrf.mxu0 }
 0x472   : > { %v1967_v6 = vadd.f32 %v1966_v4, %v1243_v3  ;;  %v2119_v10 = vadd.f32 %v2118_v5, %v1243_v3 }
 0x473   : > { %v5217_v7 = vpop.f32.mrf.mxu1  ;;  %v5227_v9 = vpop.f32.mrf.mxu0 }
 0x474   : > { %v2198_v11 = vsel %vm1893_vm2, %v1967_v6, -inf  ;;  %v2204_v15 = vsel %vm1893_vm2, %v2119_v10, -inf }
 0x475   : > { %2199 = vmax.xlane.f32.xlu1 %v2198_v11  ;;  %v2042_v12 = vpop.f32.mrf.mxu1 }
 0x476   : > { %v2043_v13 = vadd.f32 %v2042_v12, %v1243_v3 }
 0x477   : > { %v5222_v14 = vpop.f32.mrf.mxu1 }
 0x478   : > { %v2201_v16 = vsel %vm1893_vm2, %v2043_v13, -inf }
 0x479   : > { %2205 = vmax.xlane.f32.xlu1 %v2204_v15  ;;  %2202 = vmax.xlane.f32.xlu0 %v2201_v16  ;;  %v2194_v17 = vpop.f32.mrf.mxu1 }
 0x47a   : > { %v2195_v18 = vadd.f32 %v2194_v17, %v1243_v3 }
 0x47b   : > { %v5232_v19 = vpop.f32.mrf.mxu1 }
 0x47c   : > { %v2207_v20 = vsel %vm1893_vm2, %v2195_v18, -inf }
 0x47d   : > { %2208 = vmax.xlane.f32.xlu1 %v2207_v20 }
 0x48e   : > { %1751 = vrot.lane.b32.xlu1 %v6621_v62, %s7009_s27  ;;  %s7085_s27 = sld [smem:[#allocation49_spill]] }
 0x4fe   : > { %v2200_v21 = vpop.xlane.xlu1 %2199 }
 0x4ff   : > { %v2210_v22 = vsub.f32 %v1967_v6, %v2200_v21 }
 0x501   : > { %v2214_v23 = vmul.f32 1.442695, %v2210_v22 }
 0x502   : > { %v2206_v24 = vpop.xlane.xlu1 %2205  ;;  %v2203_v25 = vpop.xlane.xlu0 %2202 }
 0x503   : > { %5631 = vpow2.f32 %v2214_v23  ;;  %v2212_v26 = vsub.f32 %v2119_v10, %v2206_v24  ;;  %v2211_v27 = vsub.f32 %v2043_v13, %v2203_v25 }
 0x505   : > { %v2218_v28 = vmul.f32 1.442695, %v2212_v26  ;;  %v2216_v29 = vmul.f32 1.442695, %v2211_v27 }
 0x506   : > { %v2209_v30 = vpop.xlane.xlu1 %2208 }
 0x507   : > { %5633 = vpow2.f32 %v2218_v28  ;;  %v2213_v31 = vsub.f32 %v2195_v18, %v2209_v30 }
 0x508   : > { %5635 = vpow2.f32 %v2216_v29 }
 0x509   : > { %v2220_v32 = vmul.f32 1.442695, %v2213_v31 }
 0x50a   : > { %v1752_v41 = vpop.permute.xlu1 %1751 }
 0x50b   : > { %5637 = vpow2.f32 %v2220_v32  ;;  %v1757_v47 = vcombine.low %v6621_v62, %v1752_v41  ;;  %v1758_v48 = vcombine.high %v6621_v62, %v1752_v41  ;;  %v6131_v32 = vmov 0  }
 0x50c   : > { %5592 = vset.pattern.permute.xlu0 %v6131_v32 }
 0x50d   : > { %v1765_v54 = vrot.slane %v1757_v47, %v6565_v44  ;;  %v1772_v55 = vrot.slane %v1758_v48, %v6565_v44 }
 0x510   : > { %v5632_v33 = vpop.eup %5631 }
 0x511   : > { %v2222_v34 = vsel %vm1893_vm2, %v5632_v33, 0.0 }
 0x512   : > { %2223 = vadd.xlane.f32.xlu0 %v2222_v34 }
 0x514   : > { %v6632_v35 = vpop.eup %5633 }
 0x515   : > { %v5636_v36 = vpop.eup %5635  ;;  %v2228_v37 = vsel %vm1893_vm2, %v6632_v35, 0.0 }
 0x516   : > { %2229 = vadd.xlane.f32.xlu0 %v2228_v37  ;;  %v2225_v38 = vsel %vm1893_vm2, %v5636_v36, 0.0 }
 0x517   : > { %2226 = vadd.xlane.f32.xlu1 %v2225_v38 }
 0x518   : > { %v6637_v39 = vpop.eup %5637 }
 0x519   : > { %v2231_v40 = vsel %vm1893_vm2, %v6637_v39, 0.0 }
 0x51b   : > { %2232 = vadd.xlane.f32.xlu1 %v2231_v40 }
 0x52c   : > { %1754 = vrot.lane.b32.xlu1 %v6621_v62, %s7007_s23  ;;  %1748 = vrot.lane.b32.xlu0 %v6621_v62, %s7013_s1  ;;  %s7083_s23 = sld [smem:[#allocation47_spill]] }
 0x59b   : > { %v2224_v42 = vpop.xlane.xlu0 %2223 }
 0x59c   : > { %5639 = vrcp.f32 %v2224_v42 }
 0x59f   : > { %v2230_v45 = vpop.xlane.xlu0 %2229 }
 0x5a0   : > { %v2227_v43 = vpop.xlane.xlu1 %2226 }
 0x5a1   : > { %5641 = vrcp.f32 %v2227_v43 }
 0x5a2   : > { %5643 = vrcp.f32 %v2230_v45 }
 0x5a3   : > { %v1749_v49 = vpop.permute.xlu0 %1748 }
 0x5a4   : > { %v2233_v46 = vpop.xlane.xlu1 %2232 }
 0x5a5   : > { %5645 = vrcp.f32 %v2233_v46 }
 0x5a8   : > { %v1755_v51 = vpop.permute.xlu1 %1754 }
 0x5a9   : > { %v1773_v52 = vcombine.low %v1749_v49, %v1755_v51  ;;  %v1774_v53 = vcombine.high %v1749_v49, %v1755_v51  ;;  %v5640_v16 = vpop.eup %5639 }
 0x5aa   : > { %v2238_v25 = vmul.f32 %v5640_v16, %v5632_v33  ;;  %v1244_v33 = vld [vmem:[%s1235_s14] sm:$0xff]  ;;  %s7006_s14 = smov 16  }
 0x5ab   : > { %v1781_v56 = vrot.slane %v1773_v52, %v6565_v44  ;;  %v1788_v57 = vrot.slane %v1774_v53, %v6565_v44  ;;  %2689 = vperm.xlu0 %5592, %v1244_v33  }
 0x5ad   : > { %v1789_v58 = vcombine.low %v1765_v54, %v1781_v56  ;;  %v1790_v59 = vcombine.high %v1765_v54, %v1781_v56  ;;  %v1805_v60 = vcombine.low %v1772_v55, %v1788_v57  ;;  %v1806_v61 = vcombine.high %v1772_v55, %v1788_v57  ;;  %v5599_v56 = vld [vmem:[%s7079_s17 + $0x8] sm:$0xff]  }
 0x5ae   : > { %v5642_v17 = vpop.eup %5641 }
 0x5af   : > { %v1797_v62 = vrot.slane %v1789_v58, %v6567_v50  ;;  %v1804_v63 = vrot.slane %v1790_v59, %v6567_v50  ;;  %v1813_v1 = vrot.slane %v1805_v60, %v6567_v50  ;;  %v1820_v2 = vrot.slane %v1806_v61, %v6567_v50  ;;  %v5644_v22 = vpop.eup %5643 }
 0x5b0   : > { %v2239_v26 = vmul.f32 %v5642_v17, %v5636_v36  ;;  %v2240_v30 = vmul.f32 %v5644_v22, %v6632_v35 }
 0x5b1   : > { %v1825_v3 = vcombine.low %v1797_v62, %v1804_v63  ;;  %v5020_v4 = vcombine.high %v1797_v62, %v1804_v63  ;;  %v1841_v5 = vcombine.low %v1813_v1, %v1820_v2  ;;  %v5021_v6 = vcombine.high %v1813_v1, %v1820_v2 }
 0x5b2   : > { %v5646_v27 = vpop.eup %5645 }
 0x5b3   : > { %v1832_v7 = vrot.slane %v1825_v3, %v6565_v44  ;;  %v1840_v9 = vrot.slane %v5020_v4, %v6565_v44  ;;  %v1848_v10 = vrot.slane %v1841_v5, %v6565_v44  ;;  %v1856_v11 = vrot.slane %v5021_v6, %v6565_v44  ;;  %v5600_v6 = vld [vmem:[%s7079_s17] sm:$0xff]  }
 0x5b4   : > { %v2241_v31 = vmul.f32 %v5646_v27, %v6637_v39 }
 0x5b5   : > { %v1857_v12 = vcombine.low %v1832_v7, %v1840_v9  ;;  %v1873_v13 = vcombine.low %v1848_v10, %v1856_v11  ;;  %v1858_v14 = vcombine.high %v1832_v7, %v1840_v9  ;;  %v1874_v15 = vcombine.high %v1848_v10, %v1856_v11 }
 0x5b7   : > { %v1865_v18 = vrot.slane %v1857_v12, %v6567_v50  ;;  %v1881_v19 = vrot.slane %v1873_v13, %v6567_v50  ;;  %v1872_v20 = vrot.slane %v1858_v14, %v6567_v50  ;;  %v1888_v21 = vrot.slane %v1874_v15, %v6567_v50 }
 0x5b9   : > { %v1889_v23 = vcombine.low %v1865_v18, %v1881_v19  ;;  %v1890_v24 = vcombine.high %v1865_v18, %v1881_v19  ;;  %v1891_v28 = vcombine.low %v1872_v20, %v1888_v21  ;;  %v1892_v29 = vcombine.high %v1872_v20, %v1888_v21 }
 0x5bb   : > { %5234 = vmatpush3.msra.mxu0 %v1889_v23  ;;  %5239 = vmatpush3.msra.mxu1 %v1890_v24 }
 0x5bc   : > { %5236 = vmatmul.mubr.msk.f32.vlgmr.msra.gmra.mxu0 %vm1893_vm2, %v2238_v25  ;;  %5241 = vmatmul.mubr.msk.f32.vlgmr.msra.gmra.mxu1 %vm1893_vm2, %v2239_v26 }
 0x5bd   : > { %5243 = vmatprep.subr.mxu0 %v6124_v8  ;;  %5248 = vmatprep.subr.mxu1 %v6124_v8 }
 0x5be   : > { %5244 = vmatpush3.msra.mxu0 %v1891_v28  ;;  %5249 = vmatpush3.msra.mxu1 %v1892_v29 }
 0x5bf   : > { %5245 = vmatprep.mubr.msk.f32.mxu0 %vm6125_vm1, %v6124_v8  ;;  %5250 = vmatprep.mubr.msk.f32.mxu1 %vm6125_vm1, %v6124_v8 }
 0x5c0   : > { %5246 = vmatmul.mubr.msk.f32.vlgmr.msra.gmra.mxu0 %vm1893_vm2, %v2240_v30  ;;  %5251 = vmatmul.mubr.msk.f32.vlgmr.msra.gmra.mxu1 %vm1893_vm2, %v2241_v31 }
 0x5c1   : > { %5253 = vmatprep.subr.bf16.mxu0 %v6124_v8  ;;  %5257 = vmatprep.mubr.msk.bf16.mxu0 %vm6125_vm1, %v6124_v8 }
 0x5c2   : > { %5261 = vmatprep.subr.bf16.mxu1 %v6124_v8  ;;  %5265 = vmatprep.mubr.msk.bf16.mxu1 %vm6125_vm1, %v6124_v8 }
 0x5c3   : > { %5254 = vmatpush3.bf16.msra.mxu0 %v5599_v56 }
 0x5c4   : > { %5255 = vmatprep.subr.bf16.mxu0 %v6124_v8 }
 0x5c7   : > { %5256 = vmatpush3.bf16.msra.mxu0 %v5600_v6 }
 0x5c8   : > { %5269 = vmatprep.subr.bf16.mxu0 %v6124_v8 }
 0x626   : > { %v2690_v20 = vpop.permute.xlu0 %2689 }
 0x67c   : > { %v2311_v34 = vpop.f32.mrf.mxu0  ;;  %v2384_v35 = vpop.f32.mrf.mxu1 }
 0x67e   : > { %v5237_v36 = vpop.f32.mrf.mxu0  ;;  %v5242_v37 = vpop.f32.mrf.mxu1 }
 0x680   : > { %v2457_v38 = vpop.f32.mrf.mxu0  ;;  %v2530_v39 = vpop.f32.mrf.mxu1 }
 0x681   : > { %v2534_v40 = vcombine.low %v2311_v34, %v2457_v38  ;;  %v2535_v41 = vcombine.high %v2311_v34, %v2457_v38  ;;  %v2550_v42 = vcombine.low %v2384_v35, %v2530_v39  ;;  %v2551_v43 = vcombine.high %v2384_v35, %v2530_v39 }
 0x682   : > { %v5247_v45 = vpop.f32.mrf.mxu0  ;;  %v5252_v46 = vpop.f32.mrf.mxu1 }
 0x683   : > { %v2542_v47 = vrot.slane %v2534_v40, %v6565_v44  ;;  %v2549_v48 = vrot.slane %v2535_v41, %v6565_v44  ;;  %v2558_v49 = vrot.slane %v2550_v42, %v6565_v44  ;;  %v2565_v51 = vrot.slane %v2551_v43, %v6565_v44 }
 0x685   : > { %v2566_v52 = vcombine.low %v2542_v47, %v2558_v49  ;;  %v2567_v53 = vcombine.high %v2542_v47, %v2558_v49  ;;  %v2582_v54 = vcombine.low %v2549_v48, %v2565_v51  ;;  %v2583_v55 = vcombine.high %v2549_v48, %v2565_v51  ;;  %v5040_v51 = vld [vmem:[#allocation10] ss:$0 sm:$0xff] }
 0x687   : > { %v2574_v57 = vrot.slane %v2566_v52, %v6567_v50  ;;  %v2581_v58 = vrot.slane %v2567_v53, %v6567_v50  ;;  %v2590_v59 = vrot.slane %v2582_v54, %v6567_v50  ;;  %v2597_v60 = vrot.slane %v2583_v55, %v6567_v50 }
 0x689   : > { %v2602_v61 = vcombine.low %v2574_v57, %v2581_v58  ;;  %v5034_v62 = vcombine.high %v2574_v57, %v2581_v58  ;;  %v2618_v63 = vcombine.low %v2590_v59, %v2597_v60  ;;  %v5035_v1 = vcombine.high %v2590_v59, %v2597_v60 }
 0x68b   : > { %v2609_v2 = vrot.slane %v2602_v61, %v6565_v44  ;;  %v2617_v3 = vrot.slane %v5034_v62, %v6565_v44  ;;  %v2625_v4 = vrot.slane %v2618_v63, %v6565_v44  ;;  %v2633_v5 = vrot.slane %v5035_v1, %v6565_v44 }
 0x68d   : > { %v2635_v7 = vcombine.high %v2609_v2, %v2617_v3  ;;  %v2651_v9 = vcombine.high %v2625_v4, %v2633_v5  ;;  %v2634_v10 = vcombine.low %v2609_v2, %v2617_v3  ;;  %v2650_v11 = vcombine.low %v2625_v4, %v2633_v5 }
 0x68f   : > { %v2649_v12 = vrot.slane %v2635_v7, %v6567_v50  ;;  %v2665_v13 = vrot.slane %v2651_v9, %v6567_v50  ;;  %v2642_v14 = vrot.slane %v2634_v10, %v6567_v50  ;;  %v2658_v15 = vrot.slane %v2650_v11, %v6567_v50 }
 0x691   : > { %v2669_v16 = vcombine.high %v2649_v12, %v2665_v13  ;;  %v2667_v17 = vcombine.high %v2642_v14, %v2658_v15  ;;  %v2666_v18 = vcombine.low %v2642_v14, %v2658_v15  ;;  %v2668_v19 = vcombine.low %v2649_v12, %v2665_v13 }
 0x693   : > { %2679 = vrot.lane.b32.xlu0 %v2669_v16, %s7004_s12  ;;  %2671 = vrot.lane.b32.xlu1 %v2667_v17, %s7005_s15  ;;  %s1246_s12 = sld [smem:[#allocation2]] }
 0x694   : > { %s7080_s15 = sld [smem:[#allocation44_spill]] }
 0x697   : > { %2675 = vrot.lane.b32.xlu1 %v2668_v19, %s7006_s14  ;;  %s7081_s14 = sld [smem:[#allocation42_spill]] }
 0x699   : > { %v2753_v29 = vstv %s1246_s12  ;;  %s7082_s12 = sld [smem:[#allocation45_spill]] }
 0x69a   : > { %v5601_v42 = vld [vmem:[%s7080_s15 + $0x8] sm:$0xff]   ;;  %v5602_v43 = vld [vmem:[%s7080_s15] sm:$0xff]  }
 0x69b   : > { %5262 = vmatpush3.bf16.msra.mxu1 %v5601_v42  ;;  %v5615_v42 = vld [vmem:[%s7085_s27 + $0x8] sm:$0xff]  }
 0x69c   : > { %5263 = vmatprep.subr.bf16.mxu1 %v6124_v8 }
 0x69d   : > { %v5039_v48 = vld [vmem:[%s7081_s14] ss:$0 sm:$0xff]  ;;  %s1247_s14 = sld [smem:[#allocation3]] }
 0x69f   : > { %5264 = vmatpush3.bf16.msra.mxu1 %v5602_v43  ;;  %v5603_v55 = vld [vmem:[%s7082_s12 + $0x38] sm:$0xff]   ;;  %v5604_v56 = vld [vmem:[%s7082_s12 + $0x30] sm:$0xff]   ;;  %v5605_v57 = vld [vmem:[%s7082_s12 + $0x28] sm:$0xff]  }
 0x6a0   : > { %5289 = vmatprep.subr.bf16.mxu1 %v6124_v8  ;;  %v5606_v58 = vld [vmem:[%s7082_s12 + $0x20] sm:$0xff]   ;;  %v5607_v59 = vld [vmem:[%s7082_s12 + $0x18] sm:$0xff]   ;;  %v5608_v60 = vld [vmem:[%s7082_s12 + $0x10] sm:$0xff]  }
 0x6a1   : > { %v5609_v61 = vld [vmem:[%s7082_s12 + $0x8] sm:$0xff]   ;;  %v5610_v62 = vld [vmem:[%s7082_s12] sm:$0xff]  }
 0x6a2   : > { %v5616_v43 = vld [vmem:[%s7085_s27] sm:$0xff]  }
 0x6a3   : > { %v2959_v15 = vstv %s1247_s14  ;;  %s7084_s14 = sld [smem:[#allocation48_spill]] }
 0x705   : > { %v2672_v21 = vpop.permute.xlu1 %2671  ;;  %v2680_v24 = vpop.permute.xlu0 %2679 }
 0x706   : > { %v2682_v22 = vsel %vm1893_vm2, %v2666_v18, %v2672_v21 }
 0x709   : > { %v2676_v23 = vpop.permute.xlu1 %2675 }
 0x70a   : > { %v2684_v25 = vsel %vm2683_vm3, %v2682_v22, %v2676_v23 }
 0x70b   : > { %v2686_v26 = vsel %vm2685_vm4, %v2684_v25, %v2680_v24 }
 0x70c   : > { %v2692_v27 = vmul.f32 %v2690_v20, %v2686_v26 }
 0x70e   : > { %v2693_v28 = vpack.c.bf16 %v2692_v27, %v2692_v27 }
 0x710   : > { %5258 = vmatmul.mubr.msk.bf16.vlgmr.msra.gmra.mxu0 %vm1250_vm0, %v2693_v28  ;;  %v5611_v28 = vld [vmem:[%s7083_s23 + $0x8] sm:$0xff]  }
 0x711   : > { %5285 = vmatprep.mubr.msk.bf16.mxu0 %vm6125_vm1, %v6124_v8  ;;  %5270 = vmatpush3.bf16.msra.mxu0 %v5603_v55 }
 0x712   : > { %5271 = vmatprep.subr.bf16.mxu0 %v6124_v8 }
 0x715   : > { %5272 = vmatpush3.bf16.msra.mxu0 %v5604_v56 }
 0x716   : > { %5273 = vmatprep.subr.bf16.mxu0 %v6124_v8 }
 0x719   : > { %5274 = vmatpush3.bf16.msra.mxu0 %v5605_v57 }
 0x71a   : > { %5275 = vmatprep.subr.bf16.mxu0 %v6124_v8 }
 0x71d   : > { %5276 = vmatpush3.bf16.msra.mxu0 %v5606_v58 }
 0x71e   : > { %5277 = vmatprep.subr.bf16.mxu0 %v6124_v8 }
 0x721   : > { %5278 = vmatpush3.bf16.msra.mxu0 %v5607_v59 }
 0x722   : > { %5279 = vmatprep.subr.bf16.mxu0 %v6124_v8 }
 0x725   : > { %5280 = vmatpush3.bf16.msra.mxu0 %v5608_v60 }
 0x726   : > { %5281 = vmatprep.subr.bf16.mxu0 %v6124_v8 }
 0x729   : > { %5282 = vmatpush3.bf16.msra.mxu0 %v5609_v61 }
 0x72a   : > { %5283 = vmatprep.subr.bf16.mxu0 %v6124_v8 }
 0x72d   : > { %5284 = vmatpush3.bf16.msra.mxu0 %v5610_v62 }
 0x72e   : > { %5323 = vmatprep.subr.mxu0 %v6124_v8 }
 0x7d0   : > { %v2747_v30 = vpop.f32.mrf.mxu0 }
 0x7d1   : > { %v2754_v31 = vmul.f32 %v2753_v29, %v2747_v30  ;;  %v5612_v29 = vld [vmem:[%s7083_s23] sm:$0xff]  }
 0x7d2   : > { %v5259_v32 = vpop.f32.mrf.mxu0 }
 0x7d3   : > { %v6713_v33 = vadd.f32 %v2754_v31, %v6525_v0 }
 0x7d4   : > { %v2750_v34 = vpop.f32.mrf.mxu0 }
 0x7d5   : > { %v2758_v35 = vsel %vm1250_vm0, %v6713_v33, 0.0  ;;  %v5052_v34 = vld [vmem:[#allocation12] ss:$0 sm:$0xff] }
 0x7d6   : > { %2759 = vadd.xlane.f32.xlu1 %v2758_v35  ;;  %v5260_v36 = vpop.f32.mrf.mxu0 }
 0x7d7   : > { %v5053_v36 = vld [vmem:[#allocation13] ss:$0 sm:$0xff] }
 0x85f   : > { %v2760_v37 = vpop.xlane.xlu1 %2759 }
 0x860   : > { %v2761_v38 = vmul.f32 0.03125, %v2760_v37 }
 0x862   : > { %v2762_v39 = vsub.f32 %v6713_v33, %v2761_v38 }
 0x864   : > { %v2763_v40 = vmul.f32 %v2762_v39, %v2762_v39 }
 0x866   : > { %v2764_v41 = vsel %vm1250_vm0, %v2763_v40, 0.0 }
 0x867   : > { %2765 = vadd.xlane.f32.xlu0 %v2764_v41  ;;  %v5614_v41 = vld [vmem:[%s7084_s14] sm:$0xff]  }
 0x8f0   : > { %v2766_v0 = vpop.xlane.xlu0 %2765 }
 0x8f1   : > { %v2767_v45 = vmul.f32 0.03125, %v2766_v0  ;;  %v5054_v0 = vld [vmem:[#allocation15] ss:$0 sm:$0xff] }
 0x8f3   : > { %v2768_v46 = vadd.f32 1e-05, %v2767_v45 }
 0x8f5   : > { %5647 = vrsqrt.f32 %v2768_v46 }
 0x902   : > { %v5648_v47 = vpop.eup %5647 }
 0x903   : > { %v2770_v49 = vmul.f32 %v5648_v47, %v2762_v39  ;;  %v5613_v39 = vld [vmem:[%s7084_s14 + $0x8] sm:$0xff]  }
 0x905   : > { %v2777_v52 = vmul.f32 %v5039_v48, %v2770_v49 }
 0x907   : > { %v2784_v53 = vadd.f32 %v5040_v51, %v2777_v52  ;;  %v5058_v52 = vld [vmem:[#allocation16] ss:$0 sm:$0xff] }
 0x909   : > { %v2785_v54 = vpack.c.bf16 %v2784_v53, %v2784_v53 }
 0x90b   : > { %5266 = vmatmul.mubr.msk.bf16.vlgmr.msra.gmra.mxu1 %vm1250_vm0, %v2785_v54 }
 0x90c   : > { %5293 = vmatprep.mubr.msk.bf16.mxu1 %vm6125_vm1, %v6124_v8  ;;  %5290 = vmatpush3.bf16.msra.mxu1 %v5611_v28 }
 0x90d   : > { %5291 = vmatprep.subr.bf16.mxu1 %v6124_v8 }
 0x910   : > { %5292 = vmatpush3.bf16.msra.mxu1 %v5612_v29 }
 0x911   : > { %5297 = vmatprep.subr.bf16.mxu1 %v6124_v8 }
 0x9cb   : > { %v2839_v63 = vpop.f32.mrf.mxu1 }
 0x9cc   : > { %v2845_v1 = vmul.f32 %v2839_v63, %v2839_v63 }
 0x9cd   : > { %v5267_v2 = vpop.f32.mrf.mxu1 }
 0x9ce   : > { %v2846_v3 = vmul.f32 %v2845_v1, %v2839_v63 }
 0x9cf   : > { %v2842_v4 = vpop.f32.mrf.mxu1 }
 0x9d0   : > { %v2847_v5 = vmul.f32 0.044715, %v2846_v3 }
 0x9d1   : > { %v5268_v6 = vpop.f32.mrf.mxu1 }
 0x9d2   : > { %v2848_v7 = vadd.f32 %v2847_v5, %v2839_v63 }
 0x9d4   : > { %v2849_v9 = vmul.f32 0.7978846, %v2848_v7 }
 0x9d6   : > { %5649 = vtanh.f32 %v2849_v9 }
 0x9e3   : > { %v5650_v10 = vpop.eup %5649 }
 0x9e4   : > { %v2851_v11 = vadd.f32 1.0, %v5650_v10 }
 0x9e6   : > { %v2852_v12 = vmul.f32 0.5, %v2851_v11 }
 0x9e8   : > { %v2853_v13 = vmul.f32 %v2852_v12, %v2839_v63 }
 0x9ea   : > { %v2854_v14 = vpack.c.bf16 %v2853_v13, %v2853_v13 }
 0x9ec   : > { %5286 = vmatmul.mubr.bf16.vlgmr.msra.gmra.mxu0 %v2854_v14 }
 0x9ed   : > { %5325 = vmatprep.mubr.msk.f32.mxu0 %vm6125_vm1, %v6124_v8 }
 0xaac   : > { %v2953_v16 = vpop.f32.mrf.mxu0 }
 0xaad   : > { %v2960_v17 = vmul.f32 %v2959_v15, %v2953_v16 }
 0xaae   : > { %v5287_v18 = vpop.f32.mrf.mxu0 }
 0xaaf   : > { %v6746_v19 = vadd.f32 %v2960_v17, %v6713_v33 }
 0xab0   : > { %v2956_v20 = vpop.f32.mrf.mxu0 }
 0xab1   : > { %v2964_v21 = vsel %vm1250_vm0, %v6746_v19, 0.0 }
 0xab2   : > { %2965 = vadd.xlane.f32.xlu0 %v2964_v21  ;;  %v5288_v22 = vpop.f32.mrf.mxu0 }
 0xb3b   : > { %v2966_v23 = vpop.xlane.xlu0 %2965 }
 0xb3c   : > { %v2967_v24 = vmul.f32 0.03125, %v2966_v23 }
 0xb3e   : > { %v2968_v25 = vsub.f32 %v6746_v19, %v2967_v24 }
 0xb40   : > { %v2969_v26 = vmul.f32 %v2968_v25, %v2968_v25 }
 0xb42   : > { %v2970_v27 = vsel %vm1250_vm0, %v2969_v26, 0.0 }
 0xb43   : > { %2971 = vadd.xlane.f32.xlu1 %v2970_v27 }
 0xbcc   : > { %v2972_v30 = vpop.xlane.xlu1 %2971 }
 0xbcd   : > { %v2973_v31 = vmul.f32 0.03125, %v2972_v30 }
 0xbcf   : > { %v2974_v32 = vadd.f32 1e-05, %v2973_v31 }
 0xbd1   : > { %5651 = vrsqrt.f32 %v2974_v32 }
 0xbde   : > { %v5652_v33 = vpop.eup %5651 }
 0xbdf   : > { %v2976_v35 = vmul.f32 %v5652_v33, %v2968_v25 }
 0xbe1   : > { %v2983_v37 = vmul.f32 %v5052_v34, %v2976_v35 }
 0xbe3   : > { %v2990_v38 = vadd.f32 %v5053_v36, %v2983_v37 }
 0xbe5   : > { %v2991_v40 = vpack.c.bf16 %v2990_v38, %v2990_v38 }
 0xbe7   : > { %5294 = vmatmul.mubr.msk.bf16.vlgmr.msra.gmra.mxu1 %vm1250_vm0, %v2991_v40 }
 0xbe8   : > { %5298 = vmatpush3.bf16.msra.mxu1 %v5613_v39  ;;  %5301 = vmatprep.mubr.msk.bf16.mxu1 %vm6125_vm1, %v6124_v8 }
 0xbe9   : > { %5299 = vmatprep.subr.bf16.mxu1 %v6124_v8 }
 0xbec   : > { %5300 = vmatpush3.bf16.msra.mxu1 %v5614_v41 }
 0xbed   : > { %5305 = vmatprep.subr.bf16.mxu1 %v6124_v8 }
 0xbef   : > { %5302 = vmatmul.mubr.msk.bf16.vlgmr.msra.gmra.mxu1 %vm1250_vm0, %v2991_v40 }
 0xbf0   : > { %5306 = vmatpush3.bf16.msra.mxu1 %v5615_v42  ;;  %5309 = vmatprep.mubr.msk.bf16.mxu1 %vm6125_vm1, %v6124_v8 }
 0xbf1   : > { %5307 = vmatprep.subr.bf16.mxu1 %v6124_v8 }
 0xbf4   : > { %5308 = vmatpush3.bf16.msra.mxu1 %v5616_v43 }
 0xbf5   : > { %5313 = vmatprep.subr.mxu1 %v6124_v8 }
 0xbf7   : > { %5310 = vmatmul.mubr.msk.bf16.vlgmr.msra.gmra.mxu1 %vm1250_vm0, %v2991_v40 }
 0xbf8   : > { %5315 = vmatprep.mubr.msk.f32.mxu1 %vm6125_vm1, %v6124_v8 }
 0xca7   : > { %v3052_v45 = vpop.f32.mrf.mxu1 }
 0xca8   : > { %v3053_v46 = vadd.f32 %v5054_v0, %v3052_v45 }
 0xca9   : > { %v5295_v47 = vpop.f32.mrf.mxu1 }
 0xcaa   : > { %v3184_v48 = vmul.f32 0.35355338, %v3053_v46 }
 0xcab   : > { %v3055_v49 = vpop.f32.mrf.mxu1 }
 0xcac   : > { %3186 = vrot.lane.b32.xlu0 %v3184_v48, %s7013_s1 }
 0xcad   : > { %v5296_v51 = vpop.f32.mrf.mxu1 }
 0xcaf   : > { %v3115_v53 = vpop.f32.mrf.mxu1 }
 0xcb0   : > { %v3116_v54 = vadd.f32 %v5058_v52, %v3115_v53 }
 0xcb1   : > { %v5303_v55 = vpop.f32.mrf.mxu1 }
 0xcb2   : > { %3335 = vrot.lane.b32.xlu1 %v3116_v54, %s7086_s2  ;;  %3332 = vrot.lane.b32.xlu0 %v3116_v54, %s7013_s1  ;;  %s7088_s1 = sld [smem:[#allocation37_spill]] }
 0xcb3   : > { %v3118_v56 = vpop.f32.mrf.mxu1 }
 0xcb5   : > { %v5304_v57 = vpop.f32.mrf.mxu1 }
 0xcb6   : > { %3338 = vrot.lane.b32.xlu1 %v3116_v54, %s7087_s4  ;;  %3192 = vrot.lane.b32.xlu0 %v3184_v48, %s7087_s4 }
 0xcb7   : > { %v6778_v58 = vpop.f32.mrf.mxu1 }
 0xcb8   : > { %s1239_s9 = scalar_lea.vmem %s7088_s1, %s6521_s18  ;;  %s7091_s18 = smov 8  }
 0xcb9   : > { %v5311_v59 = vpop.f32.mrf.mxu1  ;;  %s7093_s1 = sld [smem:[#allocation54_spill]] }
 0xcba   : > { %3189 = vrot.lane.b32.xlu1 %v3184_v48, %s7086_s2 }
 0xcbb   : > { %v3181_v60 = vpop.f32.mrf.mxu1 }
 0xcbd   : > { %v5312_v61 = vpop.f32.mrf.mxu1 }
 0xd1e   : > { %v3187_v62 = vpop.permute.xlu0 %3186 }
 0xd24   : > { %v3336_v63 = vpop.permute.xlu1 %3335  ;;  %v3333_v1 = vpop.permute.xlu0 %3332 }
 0xd25   : > { %v3341_v2 = vcombine.low %v3116_v54, %v3336_v63  ;;  %v3342_v3 = vcombine.high %v3116_v54, %v3336_v63 }
 0xd27   : > { %v3349_v9 = vrot.slane %v3341_v2, %v6565_v44  ;;  %v3356_v10 = vrot.slane %v3342_v3, %v6565_v44 }
 0xd28   : > { %v3339_v4 = vpop.permute.xlu1 %3338  ;;  %v3193_v7 = vpop.permute.xlu0 %3192 }
 0xd29   : > { %v3357_v5 = vcombine.low %v3333_v1, %v3339_v4  ;;  %v3358_v6 = vcombine.high %v3333_v1, %v3339_v4  ;;  %v3211_v13 = vcombine.low %v3187_v62, %v3193_v7  ;;  %v3212_v14 = vcombine.high %v3187_v62, %v3193_v7 }
 0xd2b   : > { %v3365_v11 = vrot.slane %v3357_v5, %v6565_v44  ;;  %v3372_v12 = vrot.slane %v3358_v6, %v6565_v44  ;;  %v3219_v27 = vrot.slane %v3211_v13, %v6565_v44  ;;  %v3226_v28 = vrot.slane %v3212_v14, %v6565_v44 }
 0xd2c   : > { %v3190_v15 = vpop.permute.xlu1 %3189 }
 0xd2d   : > { %v3373_v16 = vcombine.low %v3349_v9, %v3365_v11  ;;  %v3374_v17 = vcombine.high %v3349_v9, %v3365_v11  ;;  %v3389_v18 = vcombine.low %v3356_v10, %v3372_v12  ;;  %v3390_v20 = vcombine.high %v3356_v10, %v3372_v12 }
 0xd2e   : > { %v3195_v21 = vcombine.low %v3184_v48, %v3190_v15  ;;  %v3196_v22 = vcombine.high %v3184_v48, %v3190_v15 }
 0xd2f   : > { %v3381_v23 = vrot.slane %v3373_v16, %v6567_v50  ;;  %v3388_v24 = vrot.slane %v3374_v17, %v6567_v50  ;;  %v3397_v25 = vrot.slane %v3389_v18, %v6567_v50  ;;  %v3404_v26 = vrot.slane %v3390_v20, %v6567_v50  ;;  %v1245_v20 = vld [vmem:[%s1239_s9] sm:$0xff]  ;;  %s7089_s9 = smov 120  }
 0xd30   : > { %v3203_v29 = vrot.slane %v3195_v21, %v6565_v44  ;;  %v3210_v30 = vrot.slane %v3196_v22, %v6565_v44 }
 0xd31   : > { %v3409_v31 = vcombine.low %v3381_v23, %v3388_v24  ;;  %v5068_v32 = vcombine.high %v3381_v23, %v3388_v24  ;;  %v3425_v33 = vcombine.low %v3397_v25, %v3404_v26  ;;  %v5069_v34 = vcombine.high %v3397_v25, %v3404_v26 }
 0xd32   : > { %v3227_v35 = vcombine.low %v3203_v29, %v3219_v27  ;;  %v3228_v36 = vcombine.high %v3203_v29, %v3219_v27  ;;  %v3243_v37 = vcombine.low %v3210_v30, %v3226_v28  ;;  %v3244_v38 = vcombine.high %v3210_v30, %v3226_v28 }
 0xd33   : > { %v3416_v39 = vrot.slane %v3409_v31, %v6565_v44  ;;  %v3424_v40 = vrot.slane %v5068_v32, %v6565_v44  ;;  %v3432_v41 = vrot.slane %v3425_v33, %v6565_v44  ;;  %v3440_v42 = vrot.slane %v5069_v34, %v6565_v44 }
 0xd34   : > { %v3235_v43 = vrot.slane %v3227_v35, %v6567_v50  ;;  %v3242_v0 = vrot.slane %v3228_v36, %v6567_v50  ;;  %v3251_v45 = vrot.slane %v3243_v37, %v6567_v50  ;;  %v3258_v46 = vrot.slane %v3244_v38, %v6567_v50  ;;  %v5062_v37 = vld [vmem:[#allocation18] ss:$0 sm:$0xff] }
 0xd35   : > { %v3441_v47 = vcombine.low %v3416_v39, %v3424_v40  ;;  %v3442_v48 = vcombine.high %v3416_v39, %v3424_v40  ;;  %v3457_v49 = vcombine.low %v3432_v41, %v3440_v42  ;;  %v3458_v51 = vcombine.high %v3432_v41, %v3440_v42 }
 0xd36   : > { %v3263_v52 = vcombine.low %v3235_v43, %v3242_v0  ;;  %v5066_v53 = vcombine.high %v3235_v43, %v3242_v0  ;;  %v3279_v54 = vcombine.low %v3251_v45, %v3258_v46  ;;  %v5067_v55 = vcombine.high %v3251_v45, %v3258_v46 }
 0xd37   : > { %v3449_v56 = vrot.slane %v3441_v47, %v6567_v50  ;;  %v3465_v57 = vrot.slane %v3457_v49, %v6567_v50  ;;  %v3456_v59 = vrot.slane %v3442_v48, %v6567_v50  ;;  %v3472_v60 = vrot.slane %v3458_v51, %v6567_v50 }
 0xd38   : > { %v3270_v61 = vrot.slane %v3263_v52, %v6565_v44  ;;  %v3278_v62 = vrot.slane %v5066_v53, %v6565_v44  ;;  %v3286_v63 = vrot.slane %v3279_v54, %v6565_v44  ;;  %v3294_v1 = vrot.slane %v5067_v55, %v6565_v44 }
 0xd39   : > { %v3473_v2 = vcombine.low %v3449_v56, %v3465_v57  ;;  %v3475_v3 = vcombine.low %v3456_v59, %v3472_v60  ;;  %v3474_v15 = vcombine.high %v3449_v56, %v3465_v57  ;;  %v3476_v17 = vcombine.high %v3456_v59, %v3472_v60 }
 0xd3a   : > { %v3295_v4 = vcombine.low %v3270_v61, %v3278_v62  ;;  %v3296_v5 = vcombine.high %v3270_v61, %v3278_v62  ;;  %v3311_v6 = vcombine.low %v3286_v63, %v3294_v1  ;;  %v3312_v7 = vcombine.high %v3286_v63, %v3294_v1 }
 0xd3b   : > { %5314 = vmatpush3.xpose.msk.msra.mxu1 %vm1893_vm2, %v3473_v2  ;;  %5324 = vmatpush3.xpose.msk.msra.mxu0 %vm1893_vm2, %v3475_v3  ;;  %v3179_v38 = vadd.f32 %v5062_v37, %v6778_v58 }
 0xd3c   : > { %5318 = vmatprep.subr.mxu1 %v6124_v8  ;;  %v3303_v9 = vrot.slane %v3295_v4, %v6567_v50  ;;  %v3319_v10 = vrot.slane %v3311_v6, %v6567_v50  ;;  %v3310_v11 = vrot.slane %v3296_v5, %v6567_v50  ;;  %v3326_v12 = vrot.slane %v3312_v7, %v6567_v50 }
 0xd3d   : > { %5333 = vmatprep.subr.mxu0 %v6124_v8 }
 0xd3e   : > { %v3327_v13 = vcombine.low %v3303_v9, %v3319_v10  ;;  %v3329_v14 = vcombine.low %v3310_v11, %v3326_v12  ;;  %v3328_v16 = vcombine.high %v3303_v9, %v3319_v10  ;;  %v3330_v18 = vcombine.high %v3310_v11, %v3326_v12 }
 0xd40   : > { %5316 = vmatmul.mubr.msk.f32.vlgmr.msra.gmra.mxu1 %vm1893_vm2, %v3327_v13  ;;  %5326 = vmatmul.mubr.msk.f32.vlgmr.msra.gmra.mxu0 %vm1893_vm2, %v3329_v14 }
 0xd41   : > { %5319 = vmatpush3.xpose.msk.msra.mxu1 %vm1893_vm2, %v3474_v15  ;;  %5320 = vmatprep.mubr.msk.f32.mxu1 %vm6125_vm1, %v6124_v8 }
 0xd42   : > { %5328 = vmatprep.subr.mxu1 %v6124_v8  ;;  %5335 = vmatprep.mubr.msk.f32.mxu0 %vm6125_vm1, %v6124_v8 }
 0xd44   : > { %5321 = vmatmul.mubr.msk.f32.vlgmr.msra.gmra.mxu1 %vm1893_vm2, %v3328_v16 }
 0xd45   : > { %5329 = vmatpush3.xpose.msk.msra.mxu1 %vm1893_vm2, %v3476_v17  ;;  %5330 = vmatprep.mubr.msk.f32.mxu1 %vm6125_vm1, %v6124_v8 }
 0xd46   : > { %5338 = vmatprep.subr.mxu1 %v6124_v8 }
 0xd48   : > { %5331 = vmatmul.mubr.msk.f32.vlgmr.msra.gmra.mxu1 %vm1893_vm2, %v3330_v18 }
 0xd49   : > { %5340 = vmatprep.mubr.msk.f32.mxu1 %vm6125_vm1, %v6124_v8 }
 0xe00   : > { %v3695_v21 = vpop.f32.mrf.mxu1  ;;  %v3847_v22 = vpop.f32.mrf.mxu0 }
 0xe01   : > { %v3696_v23 = vadd.f32 %v3695_v21, %v1245_v20  ;;  %v3848_v30 = vadd.f32 %v3847_v22, %v1245_v20 }
 0xe02   : > { %v5317_v24 = vpop.f32.mrf.mxu1  ;;  %v5327_v25 = vpop.f32.mrf.mxu0 }
 0xe03   : > { %v3927_v26 = vsel %vm1893_vm2, %v3696_v23, -inf  ;;  %v3933_v35 = vsel %vm1893_vm2, %v3848_v30, -inf }
 0xe04   : > { %3928 = vmax.xlane.f32.xlu1 %v3927_v26  ;;  %v3771_v27 = vpop.f32.mrf.mxu1 }
 0xe05   : > { %v3772_v28 = vadd.f32 %v3771_v27, %v1245_v20 }
 0xe06   : > { %v5322_v29 = vpop.f32.mrf.mxu1 }
 0xe07   : > { %v3930_v31 = vsel %vm1893_vm2, %v3772_v28, -inf }
 0xe08   : > { %3931 = vmax.xlane.f32.xlu0 %v3930_v31  ;;  %v3923_v32 = vpop.f32.mrf.mxu1 }
 0xe09   : > { %v3924_v33 = vadd.f32 %v3923_v32, %v1245_v20 }
 0xe0a   : > { %v5332_v34 = vpop.f32.mrf.mxu1 }
 0xe0b   : > { %v3936_v36 = vsel %vm1893_vm2, %v3924_v33, -inf }
 0xe0c   : > { %3934 = vmax.xlane.f32.xlu0 %v3933_v35  ;;  %3937 = vmax.xlane.f32.xlu1 %v3936_v36 }
 0xe1d   : > { %3481 = vrot.lane.b32.xlu1 %v3179_v38, %s7086_s2  ;;  %s7092_s2 = smov 24  }
 0xe8d   : > { %v3929_v39 = vpop.xlane.xlu1 %3928 }
 0xe8e   : > { %v3939_v40 = vsub.f32 %v3696_v23, %v3929_v39 }
 0xe90   : > { %v3943_v41 = vmul.f32 1.442695, %v3939_v40 }
 0xe91   : > { %v3932_v42 = vpop.xlane.xlu0 %3931 }
 0xe92   : > { %5653 = vpow2.f32 %v3943_v41  ;;  %v3940_v43 = vsub.f32 %v3772_v28, %v3932_v42 }
 0xe94   : > { %v3945_v0 = vmul.f32 1.442695, %v3940_v43 }
 0xe95   : > { %v3935_v45 = vpop.xlane.xlu0 %3934  ;;  %v3938_v46 = vpop.xlane.xlu1 %3937 }
 0xe96   : > { %5655 = vpow2.f32 %v3945_v0  ;;  %v3941_v47 = vsub.f32 %v3848_v30, %v3935_v45  ;;  %v3942_v48 = vsub.f32 %v3924_v33, %v3938_v46 }
 0xe98   : > { %v3947_v49 = vmul.f32 1.442695, %v3941_v47  ;;  %v3949_v51 = vmul.f32 1.442695, %v3942_v48 }
 0xe99   : > { %v3482_v60 = vpop.permute.xlu1 %3481 }
 0xe9a   : > { %5657 = vpow2.f32 %v3947_v49  ;;  %v3487_v2 = vcombine.low %v3179_v38, %v3482_v60  ;;  %v3488_v3 = vcombine.high %v3179_v38, %v3482_v60 }
 0xe9b   : > { %5659 = vpow2.f32 %v3949_v51 }
 0xe9c   : > { %v3495_v9 = vrot.slane %v3487_v2, %v6565_v44  ;;  %v3502_v10 = vrot.slane %v3488_v3, %v6565_v44 }
 0xe9f   : > { %v5654_v52 = vpop.eup %5653 }
 0xea0   : > { %v3951_v58 = vsel %vm1893_vm2, %v5654_v52, 0.0 }
 0xea1   : > { %3952 = vadd.xlane.f32.xlu0 %v3951_v58 }
 0xea3   : > { %v5656_v53 = vpop.eup %5655 }
 0xea4   : > { %v3954_v54 = vsel %vm1893_vm2, %v5656_v53, 0.0 }
 0xea5   : > { %3955 = vadd.xlane.f32.xlu1 %v3954_v54 }
 0xea7   : > { %v6843_v55 = vpop.eup %5657 }
 0xea8   : > { %v6845_v56 = vpop.eup %5659  ;;  %v3957_v57 = vsel %vm1893_vm2, %v6843_v55, 0.0 }
 0xea9   : > { %3958 = vadd.xlane.f32.xlu0 %v3957_v57  ;;  %v3960_v59 = vsel %vm1893_vm2, %v6845_v56, 0.0 }
 0xeaa   : > { %3961 = vadd.xlane.f32.xlu1 %v3960_v59 }
 0xebb   : > { %3484 = vrot.lane.b32.xlu1 %v3179_v38, %s7087_s4  ;;  %s7090_s4 = smov 16  }
 0xebf   : > { %3478 = vrot.lane.b32.xlu0 %v3179_v38, %s7089_s9  ;;  %s7094_s9 = sld [smem:[#allocation53_spill]] }
 0xf2a   : > { %v3953_v61 = vpop.xlane.xlu0 %3952 }
 0xf2b   : > { %5661 = vrcp.f32 %v3953_v61 }
 0xf2e   : > { %v3956_v62 = vpop.xlane.xlu1 %3955 }
 0xf2f   : > { %5663 = vrcp.f32 %v3956_v62 }
 0xf32   : > { %v3959_v63 = vpop.xlane.xlu0 %3958 }
 0xf33   : > { %v3962_v1 = vpop.xlane.xlu1 %3961  ;;  %5665 = vrcp.f32 %v3959_v63 }
 0xf34   : > { %5667 = vrcp.f32 %v3962_v1 }
 0xf36   : > { %v3479_v4 = vpop.permute.xlu0 %3478 }
 0xf37   : > { %v3485_v5 = vpop.permute.xlu1 %3484 }
 0xf38   : > { %v3503_v6 = vcombine.low %v3479_v4, %v3485_v5  ;;  %v3504_v7 = vcombine.high %v3479_v4, %v3485_v5  ;;  %v5662_v34 = vpop.eup %5661 }
 0xf39   : > { %v3967_v43 = vmul.f32 %v5662_v34, %v5654_v52 }
 0xf3a   : > { %v3511_v11 = vrot.slane %v3503_v6, %v6565_v44  ;;  %v3518_v12 = vrot.slane %v3504_v7, %v6565_v44 }
 0xf3c   : > { %v3519_v13 = vcombine.low %v3495_v9, %v3511_v11  ;;  %v3520_v14 = vcombine.high %v3495_v9, %v3511_v11  ;;  %v3535_v15 = vcombine.low %v3502_v10, %v3518_v12  ;;  %v3536_v16 = vcombine.high %v3502_v10, %v3518_v12  ;;  %v5664_v35 = vpop.eup %5663  ;;  %v5617_v9 = vld [vmem:[#allocation19 + $0x8] sm:$0xff]  }
 0xf3d   : > { %v3968_v0 = vmul.f32 %v5664_v35, %v5656_v53 }
 0xf3e   : > { %v3527_v17 = vrot.slane %v3519_v13, %v6567_v50  ;;  %v3534_v18 = vrot.slane %v3520_v14, %v6567_v50  ;;  %v3543_v20 = vrot.slane %v3535_v15, %v6567_v50  ;;  %v3550_v21 = vrot.slane %v3536_v16, %v6567_v50 }
 0xf40   : > { %v3555_v22 = vcombine.low %v3527_v17, %v3534_v18  ;;  %v5070_v23 = vcombine.high %v3527_v17, %v3534_v18  ;;  %v3571_v24 = vcombine.low %v3543_v20, %v3550_v21  ;;  %v5071_v25 = vcombine.high %v3543_v20, %v3550_v21  ;;  %v5666_v40 = vpop.eup %5665  ;;  %v5618_v18 = vld [vmem:[#allocation19] sm:$0xff]  }
 0xf41   : > { %v5668_v45 = vpop.eup %5667  ;;  %v3969_v48 = vmul.f32 %v5666_v40, %v6843_v55 }
 0xf42   : > { %v3562_v26 = vrot.slane %v3555_v22, %v6565_v44  ;;  %v3570_v27 = vrot.slane %v5070_v23, %v6565_v44  ;;  %v3578_v28 = vrot.slane %v3571_v24, %v6565_v44  ;;  %v3586_v29 = vrot.slane %v5071_v25, %v6565_v44 }
 0xf43   : > { %v3970_v49 = vmul.f32 %v5668_v45, %v6845_v56 }
 0xf44   : > { %v3587_v30 = vcombine.low %v3562_v26, %v3570_v27  ;;  %v3603_v31 = vcombine.low %v3578_v28, %v3586_v29  ;;  %v3588_v32 = vcombine.high %v3562_v26, %v3570_v27  ;;  %v3604_v33 = vcombine.high %v3578_v28, %v3586_v29 }
 0xf46   : > { %v3595_v36 = vrot.slane %v3587_v30, %v6567_v50  ;;  %v3611_v37 = vrot.slane %v3603_v31, %v6567_v50  ;;  %v3602_v38 = vrot.slane %v3588_v32, %v6567_v50  ;;  %v3618_v39 = vrot.slane %v3604_v33, %v6567_v50 }
 0xf48   : > { %v3619_v41 = vcombine.low %v3595_v36, %v3611_v37  ;;  %v3620_v42 = vcombine.high %v3595_v36, %v3611_v37  ;;  %v3621_v46 = vcombine.low %v3602_v38, %v3618_v39  ;;  %v3622_v47 = vcombine.high %v3602_v38, %v3618_v39 }
 0xf4a   : > { %5334 = vmatpush3.msra.mxu0 %v3619_v41  ;;  %5339 = vmatpush3.msra.mxu1 %v3620_v42  ;;  %v5086_v41 = vld [vmem:[#allocation21] ss:$0 sm:$0xff] }
 0xf4b   : > { %5336 = vmatmul.mubr.msk.f32.vlgmr.msra.gmra.mxu0 %vm1893_vm2, %v3967_v43  ;;  %5341 = vmatmul.mubr.msk.f32.vlgmr.msra.gmra.mxu1 %vm1893_vm2, %v3968_v0 }
 0xf4c   : > { %5343 = vmatprep.subr.mxu0 %v6124_v8  ;;  %5348 = vmatprep.subr.mxu1 %v6124_v8 }
 0xf4d   : > { %5344 = vmatpush3.msra.mxu0 %v3621_v46  ;;  %5349 = vmatpush3.msra.mxu1 %v3622_v47 }
 0xf4e   : > { %5345 = vmatprep.mubr.msk.f32.mxu0 %vm6125_vm1, %v6124_v8  ;;  %5350 = vmatprep.mubr.msk.f32.mxu1 %vm6125_vm1, %v6124_v8 }
 0xf4f   : > { %5346 = vmatmul.mubr.msk.f32.vlgmr.msra.gmra.mxu0 %vm1893_vm2, %v3969_v48  ;;  %5351 = vmatmul.mubr.msk.f32.vlgmr.msra.gmra.mxu1 %vm1893_vm2, %v3970_v49 }
 0xf50   : > { %5353 = vmatprep.subr.bf16.mxu0 %v6124_v8  ;;  %5357 = vmatprep.mubr.msk.bf16.mxu0 %vm6125_vm1, %v6124_v8 }
 0xf51   : > { %5361 = vmatprep.subr.bf16.mxu1 %v6124_v8  ;;  %5365 = vmatprep.mubr.msk.bf16.mxu1 %vm6125_vm1, %v6124_v8 }
 0xf52   : > { %5354 = vmatpush3.bf16.msra.mxu0 %v5617_v9  ;;  %v5626_v9 = vld [vmem:[%s7043_s5 + $0x10] sm:$0xff]  }
 0xf53   : > { %5355 = vmatprep.subr.bf16.mxu0 %v6124_v8 }
 0xf56   : > { %5356 = vmatpush3.bf16.msra.mxu0 %v5618_v18 }
 0xf57   : > { %5369 = vmatprep.subr.bf16.mxu0 %v6124_v8 }
0x100b   : > { %v4040_v51 = vpop.f32.mrf.mxu0  ;;  %v4113_v52 = vpop.f32.mrf.mxu1 }
0x100d   : > { %v5337_v58 = vpop.f32.mrf.mxu0  ;;  %v5342_v53 = vpop.f32.mrf.mxu1 }
0x100f   : > { %v4186_v54 = vpop.f32.mrf.mxu0  ;;  %v4259_v55 = vpop.f32.mrf.mxu1 }
0x1010   : > { %v4263_v56 = vcombine.low %v4040_v51, %v4186_v54  ;;  %v4264_v57 = vcombine.high %v4040_v51, %v4186_v54  ;;  %v4279_v59 = vcombine.low %v4113_v52, %v4259_v55  ;;  %v4280_v60 = vcombine.high %v4113_v52, %v4259_v55  ;;  %v5619_v54 = vld [vmem:[%s7093_s1 + $0x8] sm:$0xff]  }
0x1011   : > { %v5347_v61 = vpop.f32.mrf.mxu0  ;;  %v5352_v62 = vpop.f32.mrf.mxu1  ;;  %5362 = vmatpush3.bf16.msra.mxu1 %v5619_v54 }
0x1012   : > { %v4271_v63 = vrot.slane %v4263_v56, %v6565_v44  ;;  %v4278_v1 = vrot.slane %v4264_v57, %v6565_v44  ;;  %v4287_v2 = vrot.slane %v4279_v59, %v6565_v44  ;;  %v4294_v3 = vrot.slane %v4280_v60, %v6565_v44  ;;  %5363 = vmatprep.subr.bf16.mxu1 %v6124_v8  ;;  %v5090_v60 = vld [vmem:[#allocation22] ss:$0 sm:$0xff]  ;;  %v5091_v62 = vld [vmem:[%s7094_s9] ss:$0 sm:$0xff] }
0x1014   : > { %v4295_v4 = vcombine.low %v4271_v63, %v4287_v2  ;;  %v4296_v5 = vcombine.high %v4271_v63, %v4287_v2  ;;  %v4311_v6 = vcombine.low %v4278_v1, %v4294_v3  ;;  %v4312_v7 = vcombine.high %v4278_v1, %v4294_v3  ;;  %v5621_v3 = vld [vmem:[%s7043_s5 + $0x38] sm:$0xff]  }
0x1016   : > { %v4303_v10 = vrot.slane %v4295_v4, %v6567_v50  ;;  %v4310_v11 = vrot.slane %v4296_v5, %v6567_v50  ;;  %v4319_v12 = vrot.slane %v4311_v6, %v6567_v50  ;;  %v4326_v13 = vrot.slane %v4312_v7, %v6567_v50  ;;  %v5622_v4 = vld [vmem:[%s7043_s5 + $0x30] sm:$0xff]   ;;  %v5623_v5 = vld [vmem:[%s7043_s5 + $0x28] sm:$0xff]   ;;  %v5624_v6 = vld [vmem:[%s7043_s5 + $0x20] sm:$0xff]  }
0x1017   : > { %v5625_v7 = vld [vmem:[%s7043_s5 + $0x18] sm:$0xff]  }
0x1018   : > { %v4331_v14 = vcombine.low %v4303_v10, %v4310_v11  ;;  %v5084_v15 = vcombine.high %v4303_v10, %v4310_v11  ;;  %v4347_v16 = vcombine.low %v4319_v12, %v4326_v13  ;;  %v5085_v17 = vcombine.high %v4319_v12, %v4326_v13  ;;  %v5627_v10 = vld [vmem:[%s7043_s5 + $0x8] sm:$0xff]   ;;  %v5628_v11 = vld [vmem:[%s7043_s5] sm:$0xff]   ;;  %s4702_s5 = scalar_lea.sflag [#allocation6], %s6485_s16 }
0x1019   : > { %v5092_v12 = vld [vmem:[%s7095_s3] ss:$0 sm:$0xff] }
0x101a   : > { %v4338_v20 = vrot.slane %v4331_v14, %v6565_v44  ;;  %v4346_v21 = vrot.slane %v5084_v15, %v6565_v44  ;;  %v4354_v22 = vrot.slane %v4347_v16, %v6565_v44  ;;  %v4362_v23 = vrot.slane %v5085_v17, %v6565_v44 }
0x101c   : > { %v4364_v24 = vcombine.high %v4338_v20, %v4346_v21  ;;  %v4380_v25 = vcombine.high %v4354_v22, %v4362_v23  ;;  %v4363_v26 = vcombine.low %v4338_v20, %v4346_v21  ;;  %v4379_v27 = vcombine.low %v4354_v22, %v4362_v23 }
0x101e   : > { %v4378_v28 = vrot.slane %v4364_v24, %v6567_v50  ;;  %v4394_v29 = vrot.slane %v4380_v25, %v6567_v50  ;;  %v4371_v30 = vrot.slane %v4363_v26, %v6567_v50  ;;  %v4387_v31 = vrot.slane %v4379_v27, %v6567_v50 }
0x1020   : > { %v4397_v32 = vcombine.low %v4378_v28, %v4394_v29  ;;  %v4396_v33 = vcombine.high %v4371_v30, %v4387_v31  ;;  %v4395_v34 = vcombine.low %v4371_v30, %v4387_v31  ;;  %v4398_v44 = vcombine.high %v4378_v28, %v4394_v29  ;;  %v5096_v28 = vld [vmem:[%s6304_s28] ss:$0 sm:$0xff] }
0x1022   : > { %4404 = vrot.lane.b32.xlu1 %v4397_v32, %s7090_s4  ;;  %4400 = vrot.lane.b32.xlu0 %v4396_v33, %s7091_s18  ;;  %s7096_s4 = sld [smem:[#allocation57_spill]]  ;;  %s5000_s18 = sshll.u32 %s6485_s16, 3 }
0x1023   : > { %s1223_s9 = scalar_lea.vmem [#allocation24], %s5000_s18 }
0x1026   : > { %4408 = vrot.lane.b32.xlu0 %v4398_v44, %s7092_s2  ;;  %s5106_s2 = sshll.u32 %s6334_s20, 7  ;;  %s6135_s20 = smov [#allocation24]  }
0x1027   : > { %s5991_s18 = sshll.u32 %s6135_s20, 4  ;;  %s5992_s18 = int_to_ptr.vmem [resolvable:$false] %s5991_s18 }
0x1028   : > { %s6947_s3 = scalar_lea.hbm %s7096_s4, %s5106_s2  ;;  %s5993_s2 = scalar_lea.vmem %s5992_s18, 256 }
0x1094   : > { %v4401_v35 = vpop.permute.xlu0 %4400  ;;  %v4405_v36 = vpop.permute.xlu1 %4404 }
0x1095   : > { %v4411_v37 = vsel %vm1893_vm2, %v4395_v34, %v4401_v35 }
0x1096   : > { %v4412_v39 = vsel %vm2683_vm3, %v4411_v37, %v4405_v36 }
0x1098   : > { %v4409_v38 = vpop.permute.xlu0 %4408 }
0x1099   : > { %v4413_v40 = vsel %vm2685_vm4, %v4412_v39, %v4409_v38 }
0x109a   : > { %v4414_v50 = vpack.c.bf16 %v4413_v40, %v4413_v40 }
0x109c   : > { %5358 = vmatmul.mubr.msk.bf16.vlgmr.msra.gmra.mxu0 %vm1250_vm0, %v4414_v50 }
0x109d   : > { %5385 = vmatprep.mubr.msk.bf16.mxu0 %vm6125_vm1, %v6124_v8  ;;  %5370 = vmatpush3.bf16.msra.mxu0 %v5621_v3 }
0x109e   : > { %5371 = vmatprep.subr.bf16.mxu0 %v6124_v8 }
0x10a1   : > { %5372 = vmatpush3.bf16.msra.mxu0 %v5622_v4 }
0x10a2   : > { %5373 = vmatprep.subr.bf16.mxu0 %v6124_v8 }
0x10a5   : > { %5374 = vmatpush3.bf16.msra.mxu0 %v5623_v5 }
0x10a6   : > { %5375 = vmatprep.subr.bf16.mxu0 %v6124_v8 }
0x10a9   : > { %5376 = vmatpush3.bf16.msra.mxu0 %v5624_v6 }
0x10aa   : > { %5377 = vmatprep.subr.bf16.mxu0 %v6124_v8 }
0x10ad   : > { %5378 = vmatpush3.bf16.msra.mxu0 %v5625_v7 }
0x10ae   : > { %5379 = vmatprep.subr.bf16.mxu0 %v6124_v8 }
0x10b1   : > { %5380 = vmatpush3.bf16.msra.mxu0 %v5626_v9 }
0x10b2   : > { %5381 = vmatprep.subr.bf16.mxu0 %v6124_v8 }
0x10b5   : > { %5382 = vmatpush3.bf16.msra.mxu0 %v5627_v10 }
0x10b6   : > { %5383 = vmatprep.subr.bf16.mxu0 %v6124_v8 }
0x10b9   : > { %5384 = vmatpush3.bf16.msra.mxu0 %v5628_v11 }
0x115c   : > { %v4475_v42 = vpop.f32.mrf.mxu0 }
0x115d   : > { %v4476_v43 = vadd.f32 %v5086_v41, %v4475_v42 }
0x115e   : > { %v5359_v0 = vpop.f32.mrf.mxu0 }
0x115f   : > { %v6915_v45 = vadd.f32 %v4476_v43, %v6746_v19  ;;  %v5620_v19 = vld [vmem:[%s7093_s1] sm:$0xff]   ;;  %s4715_s1 = sshll.u32 %s1223_s9, 4  ;;  %s6949_s1 = int_to_ptr.vmem [resolvable:$true] %s4715_s1 }
0x1160   : > { %v4478_v46 = vpop.f32.mrf.mxu0  ;;  %5364 = vmatpush3.bf16.msra.mxu1 %v5620_v19  ;;  %s5987_s12 = scalar_lea.vmem %s6949_s1, 128  ;;  %p5994_p7 = scmp.lt.s32.totalorder %s6949_s1, %s5992_s18 }
0x1161   : > { %v4484_v47 = vsel %vm1250_vm0, %v6915_v45, 0.0  ;;  %p5988_p13 = scmp.ne.s32.totalorder %s6949_s1, %s5987_s12  ;;  %p5995_p9 = scmp.lt.s32.totalorder %s5993_s2, %s5987_s12 }
0x1162   : > { %4485 = vadd.xlane.f32.xlu1 %v4484_v47  ;;  %v5360_v48 = vpop.f32.mrf.mxu0 }
0x1163   : > { %p5989_p1 = pnand %p5988_p13, %p7097_p6  ;;  %p5996_p11 = por %p5995_p9, %p5994_p7 }
0x1165   : > { %p5990_p3 = pneg %p5989_p1 }
0x1167   : > { %p5997_p12 = pnand %p5996_p11, %p5990_p3 }
0x11eb   : > { %v4486_v49 = vpop.xlane.xlu1 %4485 }
0x11ec   : > { %v4487_v51 = vmul.f32 0.03125, %v4486_v49 }
0x11ee   : > { %v4488_v52 = vsub.f32 %v6915_v45, %v4487_v51 }
0x11f0   : > { %v4489_v58 = vmul.f32 %v4488_v52, %v4488_v52 }
0x11f2   : > { %v4490_v53 = vsel %vm1250_vm0, %v4489_v58, 0.0 }
0x11f3   : > { %4491 = vadd.xlane.f32.xlu0 %v4490_v53 }
0x127c   : > { %v4492_v55 = vpop.xlane.xlu0 %4491 }
0x127d   : > { %v4493_v56 = vmul.f32 0.03125, %v4492_v55 }
0x127f   : > { %v4494_v57 = vadd.f32 1e-05, %v4493_v56 }
0x1281   : > { %5669 = vrsqrt.f32 %v4494_v57 }
0x128e   : > { %v5670_v59 = vpop.eup %5669 }
0x128f   : > { %v4496_v61 = vmul.f32 %v5670_v59, %v4488_v52 }
0x1291   : > { %v4503_v63 = vmul.f32 %v5090_v60, %v4496_v61 }
0x1293   : > { %v4510_v1 = vadd.f32 %v5091_v62, %v4503_v63 }
0x1295   : > { %v4511_v2 = vpack.c.bf16 %v4510_v1, %v4510_v1 }
0x1297   : > { %5366 = vmatmul.mubr.msk.bf16.vlgmr.msra.gmra.mxu1 %vm1250_vm0, %v4511_v2 }
0x1357   : > { %v4572_v13 = vpop.f32.mrf.mxu1 }
0x1358   : > { %v4573_v14 = vadd.f32 %v5092_v12, %v4572_v13 }
0x1359   : > { %v5367_v15 = vpop.f32.mrf.mxu1 }
0x135a   : > { %v4578_v16 = vmul.f32 %v4573_v14, %v4573_v14 }
0x135b   : > { %v4575_v17 = vpop.f32.mrf.mxu1 }
0x135c   : > { %v4579_v18 = vmul.f32 %v4578_v16, %v4573_v14 }
0x135d   : > { %v5368_v20 = vpop.f32.mrf.mxu1 }
0x135e   : > { %v4580_v21 = vmul.f32 0.044715, %v4579_v18 }
0x1360   : > { %v4581_v22 = vadd.f32 %v4580_v21, %v4573_v14 }
0x1362   : > { %v4582_v23 = vmul.f32 0.7978846, %v4581_v22 }
0x1364   : > { %5671 = vtanh.f32 %v4582_v23 }
0x1371   : > { %v5672_v24 = vpop.eup %5671 }
0x1372   : > { %v4584_v25 = vadd.f32 1.0, %v5672_v24 }
0x1374   : > { %v4585_v8 = vmul.f32 0.5, %v4584_v25 }
0x1376   : > { %v4586_v26 = vmul.f32 %v4585_v8, %v4573_v14 }
0x1378   : > { %v4587_v27 = vpack.c.bf16 %v4586_v26, %v4586_v26 }
0x137a   : > { %5386 = vmatmul.mubr.bf16.vlgmr.msra.gmra.mxu0 %v4587_v27 }
0x143a   : > { %v4693_v29 = vpop.f32.mrf.mxu0 }
0x143b   : > { %v4694_v30 = vadd.f32 %v5096_v28, %v4693_v29 }
0x143c   : > { %v5387_v31 = vpop.f32.mrf.mxu0 }
0x143d   : > { %v4699_v32 = vadd.f32 %v4694_v30, %v6915_v45 }
0x143e   : > { %v4696_v33 = vpop.f32.mrf.mxu0 }
0x143f   : > { %4700 = vst.msk [vmem:[%s1223_s9] sm:$0xff] %vm1250_vm0, %v4699_v32 }
0x1440   : > { %v5388_v34 = vpop.f32.mrf.mxu0 }
0x1441   : > { %6000 = shalt.err (!%p5997_p12)
}
0x1442   : > { %s6001_s16 = scalar_lea.hbm %s6947_s3, 128  ;;  %s6005_s9 = scalar_lea.hbm %s7096_s4, 256 }
0x1443   : > { %p6002_p0 = scmp.ne.s32.totalorder %s6947_s3, %s6001_s16  ;;  %p6006_p4 = scmp.lt.s32.totalorder %s6947_s3, %s7096_s4 }
0x1444   : > { %p6007_p2 = scmp.lt.s32.totalorder %s6005_s9, %s6001_s16 }
0x1445   : > { %p6003_p10 = pnand %p6002_p0, %p7097_p6 }
0x1446   : > { %p6008_p8 = por %p6007_p2, %p6006_p4 }
0x1447   : > { %p6004_p5 = pneg %p6003_p10 }
0x1449   : > { %p6009_p13 = pnand %p6008_p8, %p6004_p5 }
0x144b   : > { %6012 = shalt.err (!%p6009_p13)
}
0x144c   : > { %5435 = dma.vmem_to_hbm [thread:$0]  (%p7097_p6), %s6949_s1, 128, %s6947_s3, %s4702_s5  }
0x144d PF: > { %s4727_s12 = sand.u32 1, %s6063_s8   ;;  %p7098_p1 = scmp.ne.s32.totalorder %s7056_s26, 0 }
0x144e   : > { %p7099_p3 = scmp.ge.s32.totalorder %s6075_s0, 2  ;;  %s4728_s20 = scalar_lea.sflag [#allocation6], %s4727_s12 }
0x1450   : > { %p5476_p7 = pnand %p7099_p3, %p7098_p1 }
0x1452   : > { %p5477_p9 = pneg %p5476_p7 }
0x1454   : > { %6058 = dma.done.wait (%p5477_p9), %s4728_s20, 128  }
0x1455   : > { %6060 = vsyncadd (%p5477_p9), %s4728_s20, 4294967168  ;;  %p88_p11 = scmp.ge.s32.totalorder %s6434_s13, 4   ;;  %s7100_s8 = smov %s6067_s7 }
0x1456   : > { %s7101_s7 = smov %s6071_s11  ;;  %s7102_s11 = smov %s6446_s6 }
0x1457   : > { %s7103_s0 = smov %s6434_s13  ;;  %90 = sbr.rel (!%p88_p11) target bundleno = 77 (0x4d), region = 286 }
0x145c   :  { %4733 = vsyncpa [#allocation5], 1 }
0x145d   :  { %4735 = vsyncpa [#allocation5 + $0x1], 1 }
0x145e   :  { %4736 = vsyncpa [#allocation8], 1 }
0x145f   :  { %4737 = vsyncpa [#allocation11], 1 }
0x1460   :  { %4738 = vsyncpa [#allocation14], 1 }
0x1461   :  { %4739 = vsyncpa [#allocation17], 1 }
0x1462   :  { %4740 = vsyncpa [#allocation20], 1 }
0x1463   :  { %4741 = vsyncpa [#allocation23], 1 }
0x1464   :  { %4742 = vsyncpa [#allocation6], 1 }
0x1465   :  { %4744 = vsyncpa [#allocation6 + $0x1], 1 }

</bundles_post_ra>
